<compile_context>
chip_gen: v7x
topology: tpu7x:2x2x1
jax: 0.10.0
libtpu: 0.0.40
codegen_flags: <defaults>
</compile_context>

<pallas_src>
import functools
import numpy as np

import jax
import jax.numpy as jnp
from jax.experimental import pallas as pl
from jax.experimental.pallas import tpu as pltpu


# ---------------------------------------------------------------------------
# Small helpers.
# ---------------------------------------------------------------------------
def _round_up(x, m):
    return ((x + m - 1) // m) * m


@functools.lru_cache(maxsize=1)
def _vmem_limit_bytes():
    """Per-generation scoped VMEM limit: ~100 MiB on 128-MiB parts (v5e/v6e),
    48 MiB on 64-MiB parts (v7x).  Falls back to 48 MiB if the query fails."""
    cap = 64 * 1024 * 1024
    try:
        cap = int(getattr(pltpu.get_tpu_info(), "vmem_capacity_bytes", cap))
    except Exception:
        pass
    return int(min(100 * 1024 * 1024, max(cap - 16 * 1024 * 1024, 48 * 1024 * 1024)))


def _apply_act(y, act, alpha):
    if act == "relu":
        return jnp.maximum(y, 0.0)
    if act == "prelu":
        return jnp.where(y > 0.0, y, alpha * y)
    if act == "sigmoid":
        return jax.nn.sigmoid(y)
    return y  # "none"


def _pad_cols_1xN(v, n_to):
    v = jnp.asarray(v, jnp.float32).reshape(1, -1)
    n = v.shape[-1]
    if n == n_to:
        return v
    return jnp.pad(v, ((0, 0), (0, n_to - n)))


# ---------------------------------------------------------------------------
# Pallas kernel 1: (M,N,K)-tiled matmul with fused bias + activation epilogue.
# ---------------------------------------------------------------------------
def _mm_kernel(a_ref, b_ref, shift_ref, o_ref, acc_ref, *, act, alpha):
    @pl.when(pl.program_id(2) == 0)
    def _():
        acc_ref[...] = jnp.zeros_like(acc_ref)

    acc_ref[...] += jnp.dot(a_ref[...], b_ref[...],
                            preferred_element_type=jnp.float32)

    @pl.when(pl.program_id(2) == pl.num_programs(2) - 1)
    def _():
        y = acc_ref[...] + shift_ref[...]
        y = _apply_act(y, act, alpha)
        o_ref[...] = y.astype(o_ref.dtype)


def matmul_epilogue(a, b, shift, *, act="none", alpha=0.25,
                    out_dtype=jnp.float32, tm_max=512, tn_max=512, tk_max=1024):
    """Tiled Pallas matmul with fused (bias, activation) epilogue.

    A:(M,K), B:(K,N); shift broadcast over rows.  Inputs are used as bf16 on
    the MXU (no-op if the producer already emitted bf16), accumulation is f32
    in VMEM scratch.  N is padded to a multiple of 128 (lane-dense stores) only
    when needed; M/K padding is skipped whenever the shape already fits.
    """
    M, K = a.shape
    K2, N = b.shape
    assert K == K2

    Np = _round_up(N, 128)
    tn = min(Np, tn_max)          # keep tn >= 256 whenever Np allows (v6e/v7x MXU)
    while Np % tn:
        tn //= 2
    if K <= tk_max:
        Kp, tk = K, K
    else:
        Kp, tk = _round_up(K, tk_max), tk_max
    if M >= tm_max:
        tm, Mp = tm_max, _round_up(M, tm_max)
    else:
        tm = _round_up(M, 16)
        Mp = tm

    a_p = a if (Mp, Kp) == (M, K) else jnp.pad(a, ((0, Mp - M), (0, Kp - K)))
    b_p = b if (Kp, Np) == (K, N) else jnp.pad(b, ((0, Kp - K), (0, Np - N)))
    a_p = a_p.astype(jnp.bfloat16)
    b_p = b_p.astype(jnp.bfloat16)
    shift_p = _pad_cols_1xN(shift, Np)

    out = pl.pallas_call(
        functools.partial(_mm_kernel, act=act, alpha=float(alpha)),
        out_shape=jax.ShapeDtypeStruct((Mp, Np), out_dtype),
        grid=(Mp // tm, Np // tn, Kp // tk),
        in_specs=[pl.BlockSpec((tm, tk), lambda i, j, k: (i, k)),
                  pl.BlockSpec((tk, tn), lambda i, j, k: (k, j)),
                  pl.BlockSpec((1, tn), lambda i, j, k: (0, j))],
        out_specs=pl.BlockSpec((tm, tn), lambda i, j, k: (i, j)),
        scratch_shapes=[pltpu.VMEM((tm, tn), jnp.float32)],
        compiler_params=pltpu.CompilerParams(
            dimension_semantics=("parallel", "parallel", "arbitrary"),
            vmem_limit_bytes=_vmem_limit_bytes()),
    )(a_p, b_p, shift_p)

    if (Mp, Np) != (M, N):
        out = out[:M, :N]
    return out


# ---------------------------------------------------------------------------
# 1x1 conv wrapper: big matmuls -> Pallas MXU kernel, small ones -> XLA/VPU.
# ---------------------------------------------------------------------------
def _conv1x1_xla(x, weight, bias, act, alpha, out_dtype):
    y = jnp.einsum("bhwc,oc->bhwo", x.astype(jnp.float32),
                   weight.astype(jnp.float32))
    if bias is not None:
        y = y + bias
    return _apply_act(y, act, alpha).astype(out_dtype)


def conv1x1(x, weight, bias=None, *, act="none", alpha=0.25,
            out_dtype=jnp.float32, force_xla=False):
    """1x1 conv (+ bias + activation).  weight: (Cout, Cin) torch layout squeezed.

    Only genuinely MXU-sized problems (M>=512, Cin>=128, Cout>=128) are routed
    to the Pallas kernel; single-grid-step jobs stay on XLA where launch + DMA
    fixed cost would dominate.
    """
    B, H, W, C = x.shape
    Cout = weight.shape[0]
    M = B * H * W
    if force_xla or M < 512 or C < 128 or Cout < 128:
        return _conv1x1_xla(x, weight, bias, act, alpha, out_dtype)
    shift = bias if bias is not None else jnp.zeros((Cout,), jnp.float32)
    out = matmul_epilogue(x.reshape(M, C), jnp.transpose(weight, (1, 0)), shift,
                          act=act, alpha=alpha, out_dtype=out_dtype)
    return out.reshape(B, H, W, Cout)


# ---------------------------------------------------------------------------
# Pallas kernel 2: fused Conv3x3 (pad=1) + BatchNorm(eval) + PReLU.
#   - padded input stays in HBM; (th+2)-row halo slabs are manually
#     double-buffered with make_async_copy (slab i+1 prefetch overlaps compute).
#   - one im2col patch (th*W, 9*C) and a single K=9*C MXU dot per grid step.
#   - output last dim = Cout (no 128 padding, no post-kernel slice).
# ---------------------------------------------------------------------------
def _conv3x3_kernel(x_hbm, w_ref, scale_ref, shift_ref, o_ref, buf, sem,
                    *, th, act, alpha):
    b = pl.program_id(0)
    i = pl.program_id(1)
    n_i = pl.num_programs(1)
    slot = i & 1

    @pl.when(i == 0)
    def _():  # prime slot 0 for this batch element
        pltpu.make_async_copy(x_hbm.at[b, pl.ds(0, th + 2)],
                              buf.at[0], sem.at[0]).start()

    @pl.when(i + 1 < n_i)
    def _():  # prefetch the next halo slab into the other slot
        nslot = 1 - slot
        pltpu.make_async_copy(x_hbm.at[b, pl.ds((i + 1) * th, th + 2)],
                              buf.at[nslot], sem.at[nslot]).start()

    pltpu.make_async_copy(x_hbm.at[b, pl.ds(i * th, th + 2)],
                          buf.at[slot], sem.at[slot]).wait()

    x = buf[slot]                            # (th+2, W+2, C)
    W2, C = x.shape[1], x.shape[2]
    W = W2 - 2
    Cout = o_ref.shape[-1]

    # im2col: (th, W+2, 3C) via row shifts, then (th, W, 9C) via column shifts.
    rows = [x[dh:dh + th] for dh in range(3)]
    x3 = jnp.concatenate(rows, axis=-1)                       # (th, W+2, 3C)
    cols = [x3[:, dw:dw + W, :] for dw in range(3)]
    x9 = jnp.concatenate(cols, axis=-1).reshape(th * W, 9 * C)

    y = jnp.dot(x9, w_ref[...], preferred_element_type=jnp.float32)
    y = y * scale_ref[...] + shift_ref[...]                    # folded BN (+ bias)
    y = _apply_act(y, act, alpha)
    o_ref[...] = y.reshape(th, W, Cout).astype(o_ref.dtype)


def conv3x3_bn_prelu(x, weight, bias, bn_gamma, bn_beta, bn_mean, bn_var,
                     prelu_alpha, *, eps=1e-5, pre_padded=False,
                     out_dtype=jnp.bfloat16):
    """Conv2d(k=3, pad=1) + BatchNorm2d(eval) + PReLU fused in one Pallas kernel.

    weight: torch (Cout, Cin, 3, 3) layout.  If pre_padded, x already carries a
    1-pixel zero border (produced directly by the upsample einsum, in bf16).
    """
    if not pre_padded:
        x = jnp.pad(x, ((0, 0), (1, 1), (1, 1), (0, 0)))
    xp = x.astype(jnp.bfloat16)                 # no-op when producer emits bf16
    B, Hp2, Wp2, C = xp.shape
    H, W = Hp2 - 2, Wp2 - 2
    Cout = weight.shape[0]

    # weight -> (kw, kh, Cin, Cout) -> (9*C, Cout) matching im2col column order
    # (dw major, dh, c).
    w = jnp.transpose(weight, (3, 2, 1, 0)).reshape(9 * C, Cout).astype(jnp.bfloat16)

    bn_scale = bn_gamma / jnp.sqrt(bn_var + eps)
    shift = (bias - bn_mean) * bn_scale + bn_beta
    scale_2d = jnp.asarray(bn_scale, jnp.float32).reshape(1, Cout)
    shift_2d = jnp.asarray(shift, jnp.float32).reshape(1, Cout)

    # Row-tile choice: largest divisor of H whose working set fits comfortably
    # in the scoped VMEM budget (slab double-buffer + im2col + f32 result +
    # output double-buffer).
    budget = _vmem_limit_bytes() // 2
    cands = [c for c in (64, 32, 16, 8, 4, 2, 1) if H % c == 0]
    th = cands[-1]
    for c in cands:
        need = (2 * (c + 2) * Wp2 * C * 2        # slab double buffer (bf16)
                + c * W * (9 * C) * 2            # im2col patch (bf16)
                + c * W * (3 * C) * 2            # x3 intermediate (bf16)
                + c * W * Cout * 4               # f32 result
                + 2 * c * W * Cout * 2)          # output double buffer (bf16)
        if need <= budget:
            th = c
            break
    Hg = H // th

    out = pl.pallas_call(
        functools.partial(_conv3x3_kernel, th=th, act="prelu",
                          alpha=float(prelu_alpha)),
        out_shape=jax.ShapeDtypeStruct((B, H, W, Cout), out_dtype),
        grid=(B, Hg),
        in_specs=[
            pl.BlockSpec(memory_space=pl.ANY),                  # padded input, HBM
            pl.BlockSpec((9 * C, Cout), lambda b, i: (0, 0)),
            pl.BlockSpec((1, Cout), lambda b, i: (0, 0)),
            pl.BlockSpec((1, Cout), lambda b, i: (0, 0)),
        ],
        out_specs=pl.BlockSpec((None, th, W, Cout), lambda b, i: (b, i, 0, 0)),
        scratch_shapes=[
            pltpu.VMEM((2, th + 2, Wp2, C), jnp.bfloat16),      # halo slab x2
            pltpu.SemaphoreType.DMA((2,)),
        ],
        compiler_params=pltpu.CompilerParams(
            dimension_semantics=("parallel", "arbitrary"),
            vmem_limit_bytes=_vmem_limit_bytes()),
    )(xp, w, scale_2d, shift_2d)
    return out


# ---------------------------------------------------------------------------
# Separable resampling matrices (PyTorch-exact semantics), applied with einsum.
# ---------------------------------------------------------------------------
def adaptive_pool_matrix(in_size, out_size):
    P = np.zeros((out_size, in_size), np.float32)
    for i in range(out_size):
        start = (i * in_size) // out_size
        end = -((-(i + 1) * in_size) // out_size)    # ceil((i+1)*in/out)
        P[i, start:end] = 1.0 / (end - start)
    return jnp.asarray(P)


def bilinear_matrix(in_size, out_size):
    """align_corners=False bilinear interpolation weights (out_size, in_size)."""
    W = np.zeros((out_size, in_size), np.float32)
    scale = in_size / out_size
    for o in range(out_size):
        src = (o + 0.5) * scale - 0.5
        src = max(src, 0.0)
        i0 = min(int(np.floor(src)), in_size - 1)
        i1 = min(i0 + 1, in_size - 1)
        lam = src - i0
        W[o, i0] += 1.0 - lam
        W[o, i1] += lam
    return jnp.asarray(W)


# ---------------------------------------------------------------------------
# Modules.
# ---------------------------------------------------------------------------
SIZES = (1, 2, 3, 6)


def psp_module(f, params):
    """PSPModule: adaptive pools -> 1x1 conv (no bias) -> bilinear up -> cat -> 1x1+ReLU."""
    B, H, W, C = f.shape
    priors = []
    for size, w in zip(SIZES, params["stage_w"]):
        PH, PW = adaptive_pool_matrix(H, size), adaptive_pool_matrix(W, size)
        pooled = jnp.einsum("bhwc,ih,jw->bijc", f.astype(jnp.float32), PH, PW)
        # M = B*size*size <= 72: tiny matmul -> plain XLA, not the MXU kernel.
        conved = conv1x1(pooled, w, bias=None, act="none", force_xla=True)
        UH, UW = bilinear_matrix(size, H), bilinear_matrix(size, W)
        up = jnp.einsum("bijc,hi,wj->bhwc", conved, UH, UW)
        priors.append(up.astype(jnp.bfloat16))     # concat produced directly in bf16
    priors.append(f.astype(jnp.bfloat16))
    cat = jnp.concatenate(priors, axis=-1)
    # Bottleneck 1x1 conv + ReLU: big matmul -> Pallas MXU kernel; bf16 output
    # feeds the next Pallas stage directly (no extra cast/pad pass).
    return conv1x1(cat, params["bottleneck_w"], params["bottleneck_b"],
                   act="relu", out_dtype=jnp.bfloat16)


def psp_upsample(x, params):
    """PSPUpsample: 2x bilinear up (zero conv-halo folded into the interpolation
    matrices, produced directly in bf16) -> fused Conv3x3 + BN + PReLU kernel."""
    B, H, W, C = x.shape
    UH = jnp.pad(bilinear_matrix(H, 2 * H), ((1, 1), (0, 0))).astype(x.dtype)
    UW = jnp.pad(bilinear_matrix(W, 2 * W), ((1, 1), (0, 0))).astype(x.dtype)
    p = jnp.einsum("bhwc,Hh,Ww->bHWc", x, UH, UW)   # (B, 2H+2, 2W+2, C), zero border
    return conv3x3_bn_prelu(p, params["conv_w"], params["conv_b"],
                            params["bn_gamma"], params["bn_beta"],
                            params["bn_mean"], params["bn_var"],
                            params["prelu_alpha"], pre_padded=True)


def pspnet_forward(params, x_nchw, training, gt_fore, use_gt_fore):
    """Mirrors PSPNet.forward(x, training, device, gt_fore, use_gt_fore)."""
    x = jnp.transpose(x_nchw, (0, 2, 3, 1))  # NCHW -> NHWC

    # TODO(synk): ours_extractors.resnet18half backbone code is not provided;
    # stand-in foreground head: 1x1 conv + sigmoid (N=1 -> XLA/VPU path).
    fore_sigmoid = conv1x1(x, params["fore_w"], params["fore_b"], act="sigmoid")

    # TODO(synk): ours_extractors.resnet50 backbone code is not provided;
    # stand-in feature extractor: 4x avg-pool downsample + 1x1 conv + ReLU.
    # (gt_fore / use_gt_fore would feed the backbone; the stub does not consume them.)
    B, H, W, C = x.shape
    x_ds = x.reshape(B, H // 4, 4, W // 4, 4, C).mean(axis=(2, 4))
    f = conv1x1(x_ds, params["feat_w"], params["feat_b"], act="relu")

    p = psp_module(f, params["psp"])
    # TODO(synk): Dropout2d layers are identity in eval mode; training-mode dropout not modeled.
    p = psp_upsample(p, params["up1"])
    p = psp_upsample(p, params["up2"])
    p = psp_upsample(p, params["up3"])
    out = conv1x1(p, params["final_w"], params["final_b"], act="none",
                  out_dtype=jnp.float32)

    # back to NCHW to match the PyTorch return convention
    return (jnp.transpose(out, (0, 3, 1, 2)),
            jnp.transpose(fore_sigmoid, (0, 3, 1, 2)))


# ---------------------------------------------------------------------------
# Deterministic parameter init (small synthetic channel counts).
# ---------------------------------------------------------------------------
C_FEAT = 64      # stands in for psp_size=2048
PSP_OUT = 128    # stands in for 1024
UP1_OUT = 64     # stands in for 256
UP2_OUT = 32     # stands in for 64
UP3_OUT = 32     # stands in for 64
N_CLASSES = 3


def _up_params(key, cin, cout):
    kw, kb = jax.random.split(key)
    return {
        "conv_w": 0.1 * jax.random.normal(kw, (cout, cin, 3, 3), jnp.float32),
        "conv_b": 0.01 * jax.random.normal(kb, (cout,), jnp.float32),
        # torch BatchNorm2d defaults (fresh module, eval mode)
        "bn_gamma": jnp.ones((cout,), jnp.float32),
        "bn_beta": jnp.zeros((cout,), jnp.float32),
        "bn_mean": jnp.zeros((cout,), jnp.float32),
        "bn_var": jnp.ones((cout,), jnp.float32),
        "prelu_alpha": 0.25,  # torch nn.PReLU() default (single parameter)
    }


def init_params(key):
    keys = jax.random.split(key, 16)
    stage_w = [0.1 * jax.random.normal(keys[4 + i], (C_FEAT, C_FEAT), jnp.float32)
               for i in range(len(SIZES))]
    return {
        "fore_w": 0.1 * jax.random.normal(keys[0], (1, 3), jnp.float32),
        "fore_b": jnp.zeros((1,), jnp.float32),
        "feat_w": 0.1 * jax.random.normal(keys[1], (C_FEAT, 3), jnp.float32),
        "feat_b": 0.01 * jax.random.normal(keys[2], (C_FEAT,), jnp.float32),
        "psp": {
            "stage_w": stage_w,
            "bottleneck_w": 0.1 * jax.random.normal(
                keys[8], (PSP_OUT, C_FEAT * (len(SIZES) + 1)), jnp.float32),
            "bottleneck_b": 0.01 * jax.random.normal(keys[9], (PSP_OUT,), jnp.float32),
        },
        "up1": _up_params(keys[10], PSP_OUT, UP1_OUT),
        "up2": _up_params(keys[11], UP1_OUT, UP2_OUT),
        "up3": _up_params(keys[12], UP2_OUT, UP3_OUT),
        "final_w": 0.1 * jax.random.normal(keys[13], (N_CLASSES, UP3_OUT), jnp.float32),
        "final_b": jnp.zeros((N_CLASSES,), jnp.float32),
    }


# ---------------------------------------------------------------------------
# Pure-JAX references for kernel unit checks.
# ---------------------------------------------------------------------------
def _conv3x3_ref(x_padded, weight, bias, gamma, beta, mean, var, alpha, eps=1e-5):
    xf = x_padded.astype(jnp.float32)
    wf = jnp.transpose(weight, (2, 3, 1, 0)).astype(jnp.float32)   # HWIO
    y = jax.lax.conv_general_dilated(
        xf, wf, window_strides=(1, 1), padding="VALID",
        dimension_numbers=("NHWC", "HWIO", "NHWC"),
        precision=jax.lax.Precision.HIGHEST)
    scale = gamma / jnp.sqrt(var + eps)
    y = (y + bias - mean) * scale + beta
    return jnp.where(y > 0, y, alpha * y)


if __name__ == "__main__":
    # --- unit check: Pallas matmul kernel -----------------------------------
    kc1, kc2, kc3 = jax.random.split(jax.random.PRNGKey(1), 3)
    a = jax.random.normal(kc1, (512, 320), jnp.float32)
    a = a.astype(jnp.bfloat16).astype(jnp.float32)
    bm = (0.05 * jax.random.normal(kc2, (320, 128), jnp.float32))
    bm = bm.astype(jnp.bfloat16).astype(jnp.float32)
    bias = 0.01 * jax.random.normal(kc3, (128,), jnp.float32)
    got = matmul_epilogue(a, bm, bias, act="relu", out_dtype=jnp.float32)
    want = jnp.maximum(
        jnp.dot(a, bm, precision=jax.lax.Precision.HIGHEST) + bias, 0.0)
    np.testing.assert_allclose(np.asarray(got), np.asarray(want),
                               atol=2e-2, rtol=2e-2)

    # --- unit check: Pallas conv3x3 + BN + PReLU kernel (Hg > 1 path) -------
    kd = jax.random.split(jax.random.PRNGKey(2), 8)
    Ht, Wt, Ct, Cot = 24, 16, 32, 32
    xt = jax.random.normal(kd[0], (2, Ht, Wt, Ct), jnp.float32).astype(jnp.bfloat16)
    wt = (0.1 * jax.random.normal(kd[1], (Cot, Ct, 3, 3), jnp.float32))
    wt = wt.astype(jnp.bfloat16).astype(jnp.float32)
    bt = 0.01 * jax.random.normal(kd[2], (Cot,), jnp.float32)
    gamma = 1.0 + 0.1 * jax.random.normal(kd[3], (Cot,), jnp.float32)
    beta = 0.05 * jax.random.normal(kd[4], (Cot,), jnp.float32)
    mean = 0.05 * jax.random.normal(kd[5], (Cot,), jnp.float32)
    var = 1.0 + 0.1 * jax.random.uniform(kd[6], (Cot,), jnp.float32)
    xpad = jnp.pad(xt, ((0, 0), (1, 1), (1, 1), (0, 0)))
    got3 = conv3x3_bn_prelu(xpad, wt, bt, gamma, beta, mean, var, 0.25,
                            pre_padded=True).astype(jnp.float32)
    want3 = _conv3x3_ref(xpad, wt, bt, gamma, beta, mean, var, 0.25)
    np.testing.assert_allclose(np.asarray(got3), np.asarray(want3),
                               atol=1e-1, rtol=1e-1)

    # --- end-to-end forward ---------------------------------------------------
    key = jax.random.PRNGKey(0)
    k_x, k_p = jax.random.split(key)
    x = jax.random.normal(k_x, (2, 3, 64, 64), jnp.float32)        # NCHW like PyTorch
    gt_fore = jnp.zeros((2, 1, 64, 64), jnp.float32)
    params = init_params(k_p)

    fwd = jax.jit(functools.partial(pspnet_forward, params),
                  static_argnames=("training", "use_gt_fore"))
    seg, fore = fwd(x, training=False, gt_fore=gt_fore, use_gt_fore=False)
    jax.block_until_ready((seg, fore))

    assert seg.shape == (2, N_CLASSES, 128, 128), seg.shape   # 16x16 feats -> 3x 2x upsample
    assert fore.shape == (2, 1, 64, 64), fore.shape
    assert bool(jnp.all(jnp.isfinite(seg)))
    print("KERNEL_OK")
</pallas_src>

<mosaic_0001>
module attributes {stable_mosaic.version = 11 : i64} {
  func.func @_mm_kernel(%arg0: i32, %arg1: i32, %arg2: i32, %arg3: memref<512x320xbf16, #tpu.memory_space<vmem>>, %arg4: memref<320x128xbf16, #tpu.memory_space<vmem>>, %arg5: memref<1x128xf32, #tpu.memory_space<vmem>>, %arg6: memref<512x128xf32, #tpu.memory_space<vmem>>, %arg7: memref<512x128xf32, #tpu.memory_space<vmem>>) attributes {dimension_semantics = [#tpu.dimension_semantics<parallel>, #tpu.dimension_semantics<parallel>, #tpu.dimension_semantics<arbitrary>], iteration_bounds = array<i64: 1, 1, 1>, scalar_prefetch = 0 : i64, scratch_operands = 1 : i64, tpu.core_type = #tpu.core_type<tc>, window_params = [{transform_indices = @transform_0, window_bounds = array<i64: 512, 320>}, {transform_indices = @transform_1, window_bounds = array<i64: 320, 128>}, {transform_indices = @transform_2, window_bounds = array<i64: 1, 128>}, {transform_indices = @transform_3, window_bounds = array<i64: 512, 128>}]} {
    %c0_i32 = arith.constant 0 : i32
    %0 = arith.cmpi eq, %arg2, %c0_i32 : i32
    %1 = arith.extui %0 : i1 to i32
    %c0_i32_0 = arith.constant 0 : i32
    %2 = arith.cmpi ne, %1, %c0_i32_0 : i32
    scf.if %2 {
      %cst_10 = arith.constant 0.000000e+00 : f32
      %12 = vector.broadcast %cst_10 : f32 to vector<512x128xf32>
      %c0_11 = arith.constant 0 : index
      %c0_12 = arith.constant 0 : index
      %13 = vector.load %arg7[%c0_11, %c0_12] : memref<512x128xf32, #tpu.memory_space<vmem>>, vector<512x128xf32>
      tpu.vector_store %arg7[%c0_11, %c0_12], %12 {strides = array<i32>} : memref<512x128xf32, #tpu.memory_space<vmem>>, vector<512x128xf32>,
    } else {
    }
    %c0 = arith.constant 0 : index
    %c0_1 = arith.constant 0 : index
    %3 = vector.load %arg7[%c0, %c0_1] : memref<512x128xf32, #tpu.memory_space<vmem>>, vector<512x128xf32>
    %c0_2 = arith.constant 0 : index
    %c0_3 = arith.constant 0 : index
    %4 = vector.load %arg3[%c0_2, %c0_3] : memref<512x320xbf16, #tpu.memory_space<vmem>>, vector<512x320xbf16>
    %c0_4 = arith.constant 0 : index
    %c0_5 = arith.constant 0 : index
    %5 = vector.load %arg4[%c0_4, %c0_5] : memref<320x128xbf16, #tpu.memory_space<vmem>>, vector<320x128xbf16>
    %cst = arith.constant dense<0.000000e+00> : vector<512x128xf32>
    %6 = tpu.matmul %4, %5, %cst {dimension_numbers = #tpu.dot_dimension_numbers<[1], [0], [0], [1], [0, 0, 1, 1], [], []>} : vector<512x320xbf16>, vector<320x128xbf16>, vector<512x128xf32> -> vector<512x128xf32>
    %7 = arith.addf %3, %6 : vector<512x128xf32>
    %c0_6 = arith.constant 0 : index
    %c0_7 = arith.constant 0 : index
    %8 = vector.load %arg7[%c0_6, %c0_7] : memref<512x128xf32, #tpu.memory_space<vmem>>, vector<512x128xf32>
    tpu.vector_store %arg7[%c0_6, %c0_7], %7 {strides = array<i32>} : memref<512x128xf32, #tpu.memory_space<vmem>>, vector<512x128xf32>,
    %c0_i32_8 = arith.constant 0 : i32
    %9 = arith.cmpi eq, %arg2, %c0_i32_8 : i32
    %10 = arith.extui %9 : i1 to i32
    %c0_i32_9 = arith.constant 0 : i32
    %11 = arith.cmpi ne, %10, %c0_i32_9 : i32
    scf.if %11 {
      %c0_10 = arith.constant 0 : index
      %c0_11 = arith.constant 0 : index
      %12 = vector.load %arg7[%c0_10, %c0_11] : memref<512x128xf32, #tpu.memory_space<vmem>>, vector<512x128xf32>
      %c0_12 = arith.constant 0 : index
      %c0_13 = arith.constant 0 : index
      %13 = vector.load %arg5[%c0_12, %c0_13] : memref<1x128xf32, #tpu.memory_space<vmem>>, vector<1x128xf32>
      %14 = vector.broadcast %13 : vector<1x128xf32> to vector<512x128xf32>
      %15 = arith.addf %12, %14 : vector<512x128xf32>
      %cst_14 = arith.constant 0.000000e+00 : f32
      %16 = vector.broadcast %cst_14 : f32 to vector<512x128xf32>
      %17 = arith.maximumf %15, %16 : vector<512x128xf32>
      %c0_15 = arith.constant 0 : index
      %c0_16 = arith.constant 0 : index
      %18 = vector.load %arg6[%c0_15, %c0_16] : memref<512x128xf32, #tpu.memory_space<vmem>>, vector<512x128xf32>
      tpu.vector_store %arg6[%c0_15, %c0_16], %17 {strides = array<i32>} : memref<512x128xf32, #tpu.memory_space<vmem>>, vector<512x128xf32>,
    } else {
    }
    return
  }
  func.func @transform_0(%arg0: i32, %arg1: i32, %arg2: i32) -> (i32, i32) {
    %c0_i32 = arith.constant 0 : i32
    return %arg0, %arg2 : i32, i32
  }
  func.func @transform_1(%arg0: i32, %arg1: i32, %arg2: i32) -> (i32, i32) {
    %c0_i32 = arith.constant 0 : i32
    return %arg2, %arg1 : i32, i32
  }
  func.func @transform_2(%arg0: i32, %arg1: i32, %arg2: i32) -> (i32, i32) {
    %c0_i32 = arith.constant 0 : i32
    %c0_i32_0 = arith.constant 0 : i32
    return %c0_i32, %arg1 : i32, i32
  }
  func.func @transform_3(%arg0: i32, %arg1: i32, %arg2: i32) -> (i32, i32) {
    %c0_i32 = arith.constant 0 : i32
    return %arg0, %arg1 : i32, i32
  }
}

</mosaic_0001>

<bundles_post_ra>
// kernel: tpu_custom_call.1
= control target key start
LH: loop header
LB: loop body
LE: loop exit
PB: predicated region body
PF: predicated region fallthrough
CT: control target
= control target key end

     0   :  { %v2466_v1 = vmov 0   ;;  %s3109_s0 = inlined_call_operand.vmem [shape: bf16[512,320], index: 0, kind: input, shape index: {}]   ;;  %s3110_s1 = inlined_call_operand.vmem [shape: bf16[320,128], index: 1, kind: input, shape index: {}]   ;;  %s3111_s2 = inlined_call_operand.vmem [shape: f32[1,128], index: 2, kind: input, shape index: {}]   ;;  %s3112_s3 = inlined_call_operand.hbm [shape: f32[512,128], index: 3, kind: output, shape index: {}]  }
   0x1   :  { %v2294_v0 = vld [vmem:[%s3110_s1] sm:$0xff]   ;;  %1013 = vmatprep.subr.bf16.mxu0 %v2466_v1  ;;  %2258 = vmatprep.subr.bf16.mxu1 %v2466_v1  ;;  %v2295_v2 = vld [vmem:[%s3110_s1 + $0x8] sm:$0xff]   ;;  %v2296_v3 = vld [vmem:[%s3110_s1 + $0x10] sm:$0xff]  }
   0x2   :  { %1014 = vmatpush1.bf16.msra.mxu0 %v2294_v0  ;;  %2274 = vmatpush1.bf16.msra.mxu1 %v2294_v0  ;;  %v2297_v4 = vld [vmem:[%s3110_s1 + $0x18] sm:$0xff]   ;;  %v2298_v5 = vld [vmem:[%s3110_s1 + $0x20] sm:$0xff]   ;;  %v2299_v7 = vld [vmem:[%s3110_s1 + $0x28] sm:$0xff]  }
   0x3   :  { %1015 = vmatprep.subr.bf16.mxu0 %v2466_v1  ;;  %2259 = vmatprep.subr.bf16.mxu1 %v2466_v1  ;;  %v2312_v6 = vld [vmem:[%s3109_s0 + $0x4] ss:$12 sps:$4 sm:$0xff]   ;;  %v2301_v10 = vld [vmem:[%s3110_s1 + $0x38] sm:$0xff]   ;;  %v2303_v12 = vld [vmem:[%s3110_s1 + $0x48] sm:$0xff]  }
   0x4   :  { %v2315_v8 = vld [vmem:[%s3109_s0 + $0x244] ss:$12 sps:$4 sm:$0xff]   ;;  %1045 = vmatprep.mubr.bf16.mxu0 %v2312_v6  ;;  %v2305_v14 = vld [vmem:[%s3110_s1 + $0x58] sm:$0xff]   ;;  %v2307_v16 = vld [vmem:[%s3110_s1 + $0x68] sm:$0xff]  }
   0x5   :  { %1237 = vmatprep.mubr.bf16.mxu1 %v2315_v8  ;;  %v2300_v9 = vld [vmem:[%s3110_s1 + $0x30] sm:$0xff]   ;;  %v2302_v11 = vld [vmem:[%s3110_s1 + $0x40] sm:$0xff]   ;;  %v2309_v18 = vld [vmem:[%s3110_s1 + $0x78] sm:$0xff]  }
   0x6   :  { %1016 = vmatpush1.bf16.msra.mxu0 %v2295_v2  ;;  %2275 = vmatpush1.bf16.msra.mxu1 %v2295_v2  ;;  %v2304_v13 = vld [vmem:[%s3110_s1 + $0x50] sm:$0xff]   ;;  %v2306_v15 = vld [vmem:[%s3110_s1 + $0x60] sm:$0xff]   ;;  %v2317_v22 = vld [vmem:[%s3109_s0 + $0x1c] ss:$12 sps:$4 sm:$0xff]  }
   0x7   :  { %1017 = vmatprep.subr.bf16.mxu0 %v2466_v1  ;;  %2260 = vmatprep.subr.bf16.mxu1 %v2466_v1  ;;  %v2308_v17 = vld [vmem:[%s3110_s1 + $0x70] sm:$0xff]   ;;  %v2316_v19 = vld [vmem:[%s3110_s1 + $0x80] sm:$0xff]   ;;  %v2319_v23 = vld [vmem:[%s3109_s0 + $0x25c] ss:$12 sps:$4 sm:$0xff]  }
   0x8   :  { %v2310_v20 = vld [vmem:[%s3109_s0] ss:$12 sps:$4 sm:$0xff]   ;;  %v2321_v25 = vld [vmem:[%s3109_s0 + $0x18] ss:$12 sps:$4 sm:$0xff]   ;;  %v2342_v26 = vld [vmem:[%s3110_s1 + $0x90] sm:$0xff]  }
   0x9   :  { %v2313_v21 = vld [vmem:[%s3109_s0 + $0x240] ss:$12 sps:$4 sm:$0xff]   ;;  %v2322_v27 = vld [vmem:[%s3109_s0 + $0x258] ss:$12 sps:$4 sm:$0xff]   ;;  %v2327_v31 = vld [vmem:[%s3109_s0 + $0x30] ss:$12 sps:$4 sm:$0xff]  }
   0xa   :  { %1018 = vmatpush1.bf16.msra.mxu0 %v2296_v3  ;;  %2276 = vmatpush1.bf16.msra.mxu1 %v2296_v3  ;;  %v2329_v24 = vld [vmem:[%s3110_s1 + $0x88] sm:$0xff]   ;;  %v2323_v28 = vld [vmem:[%s3109_s0 + $0x34] ss:$12 sps:$4 sm:$0xff]   ;;  %v2355_v30 = vld [vmem:[%s3110_s1 + $0x98] sm:$0xff]  }
   0xb   :  { %1019 = vmatprep.subr.bf16.mxu0 %v2466_v1  ;;  %2261 = vmatprep.subr.bf16.mxu1 %v2466_v1  ;;  %v2325_v29 = vld [vmem:[%s3109_s0 + $0x274] ss:$12 sps:$4 sm:$0xff]   ;;  %v2328_v32 = vld [vmem:[%s3109_s0 + $0x270] ss:$12 sps:$4 sm:$0xff]   ;;  %v2330_v33 = vld [vmem:[%s3109_s0 + $0x4c] ss:$12 sps:$4 sm:$0xff]  }
   0xc   :  { %v2332_v34 = vld [vmem:[%s3109_s0 + $0x28c] ss:$12 sps:$4 sm:$0xff]   ;;  %v2334_v35 = vld [vmem:[%s3109_s0 + $0x48] ss:$12 sps:$4 sm:$0xff]   ;;  %v2336_v37 = vld [vmem:[%s3109_s0 + $0x64] ss:$12 sps:$4 sm:$0xff]  }
   0xd   :  { %v2335_v36 = vld [vmem:[%s3109_s0 + $0x288] ss:$12 sps:$4 sm:$0xff]   ;;  %v2338_v38 = vld [vmem:[%s3109_s0 + $0x2a4] ss:$12 sps:$4 sm:$0xff]  }
   0xe   :  { %1020 = vmatpush1.bf16.msra.mxu0 %v2297_v4  ;;  %2277 = vmatpush1.bf16.msra.mxu1 %v2297_v4 }
   0xf   :  { %1021 = vmatprep.subr.bf16.mxu0 %v2466_v1  ;;  %2262 = vmatprep.subr.bf16.mxu1 %v2466_v1 }
  0x12   :  { %1022 = vmatpush1.bf16.msra.mxu0 %v2298_v5  ;;  %2278 = vmatpush1.bf16.msra.mxu1 %v2298_v5 }
  0x13   :  { %1023 = vmatprep.subr.bf16.mxu0 %v2466_v1  ;;  %2263 = vmatprep.subr.bf16.mxu1 %v2466_v1 }
  0x16   :  { %1024 = vmatpush1.bf16.msra.mxu0 %v2299_v7  ;;  %2279 = vmatpush1.bf16.msra.mxu1 %v2299_v7 }
  0x17   :  { %1025 = vmatprep.subr.bf16.mxu0 %v2466_v1  ;;  %2264 = vmatprep.subr.bf16.mxu1 %v2466_v1 }
  0x1a   :  { %1026 = vmatpush1.bf16.msra.mxu0 %v2300_v9  ;;  %2280 = vmatpush1.bf16.msra.mxu1 %v2300_v9 }
  0x1b   :  { %1027 = vmatprep.subr.bf16.mxu0 %v2466_v1  ;;  %2265 = vmatprep.subr.bf16.mxu1 %v2466_v1 }
  0x1e   :  { %1028 = vmatpush1.bf16.msra.mxu0 %v2301_v10  ;;  %2281 = vmatpush1.bf16.msra.mxu1 %v2301_v10 }
  0x1f   :  { %1029 = vmatprep.subr.bf16.mxu0 %v2466_v1  ;;  %2266 = vmatprep.subr.bf16.mxu1 %v2466_v1 }
  0x22   :  { %1030 = vmatpush1.bf16.msra.mxu0 %v2302_v11  ;;  %2282 = vmatpush1.bf16.msra.mxu1 %v2302_v11 }
  0x23   :  { %1031 = vmatprep.subr.bf16.mxu0 %v2466_v1  ;;  %2267 = vmatprep.subr.bf16.mxu1 %v2466_v1 }
  0x26   :  { %1032 = vmatpush1.bf16.msra.mxu0 %v2303_v12  ;;  %2283 = vmatpush1.bf16.msra.mxu1 %v2303_v12 }
  0x27   :  { %1033 = vmatprep.subr.bf16.mxu0 %v2466_v1  ;;  %2268 = vmatprep.subr.bf16.mxu1 %v2466_v1 }
  0x2a   :  { %1034 = vmatpush1.bf16.msra.mxu0 %v2304_v13  ;;  %2284 = vmatpush1.bf16.msra.mxu1 %v2304_v13 }
  0x2b   :  { %1035 = vmatprep.subr.bf16.mxu0 %v2466_v1  ;;  %2269 = vmatprep.subr.bf16.mxu1 %v2466_v1 }
  0x2e   :  { %1036 = vmatpush1.bf16.msra.mxu0 %v2305_v14  ;;  %2285 = vmatpush1.bf16.msra.mxu1 %v2305_v14 }
  0x2f   :  { %1037 = vmatprep.subr.bf16.mxu0 %v2466_v1  ;;  %2270 = vmatprep.subr.bf16.mxu1 %v2466_v1 }
  0x32   :  { %1038 = vmatpush1.bf16.msra.mxu0 %v2306_v15  ;;  %2286 = vmatpush1.bf16.msra.mxu1 %v2306_v15 }
  0x33   :  { %1039 = vmatprep.subr.bf16.mxu0 %v2466_v1  ;;  %2271 = vmatprep.subr.bf16.mxu1 %v2466_v1 }
  0x36   :  { %1040 = vmatpush1.bf16.msra.mxu0 %v2307_v16  ;;  %2287 = vmatpush1.bf16.msra.mxu1 %v2307_v16 }
  0x37   :  { %1041 = vmatprep.subr.bf16.mxu0 %v2466_v1  ;;  %2272 = vmatprep.subr.bf16.mxu1 %v2466_v1 }
  0x3a   :  { %1042 = vmatpush1.bf16.msra.mxu0 %v2308_v17  ;;  %2288 = vmatpush1.bf16.msra.mxu1 %v2308_v17 }
  0x3b   :  { %1043 = vmatprep.subr.bf16.mxu0 %v2466_v1  ;;  %2273 = vmatprep.subr.bf16.mxu1 %v2466_v1 }
  0x3e   :  { %1044 = vmatpush1.bf16.msra.mxu0 %v2309_v18  ;;  %2289 = vmatpush1.bf16.msra.mxu1 %v2309_v18 }
  0x3f   :  { %2186 = vmatprep.subr.bf16.mxu1 %v2316_v19 }
  0x41   :  { %1046 = vmatmul.mubr.bf16.vlgmr.msra.gmra.mrb[0].mxu0 %v2310_v20  ;;  %1238 = vmatmul.mubr.bf16.vlgmr.msra.gmra.mrb[0].mxu1 %v2313_v21 }
  0x42   :  { %2187 = vmatpush3.bf16.msra.mxu1 %v2316_v19  ;;  %1053 = vmatprep.mubr.bf16.mxu0 %v2317_v22 }
  0x43   :  { %1245 = vmatprep.mubr.bf16.mxu1 %v2319_v23  ;;  %2188 = vmatprep.subr.bf16.mxu1 %v2329_v24 }
  0x46   :  { %2189 = vmatpush3.bf16.msra.mxu1 %v2329_v24 }
  0x47   :  { %2190 = vmatprep.subr.bf16.mxu1 %v2342_v26 }
  0x49   :  { %1054 = vmatmul.mubr.bf16.gmra.mrb[4].mxu0 %v2321_v25  ;;  %1246 = vmatmul.mubr.bf16.gmra.mrb[4].mxu1 %v2322_v27 }
  0x4a   :  { %1061 = vmatprep.mubr.bf16.mxu0 %v2323_v28  ;;  %1253 = vmatprep.mubr.bf16.mxu1 %v2325_v29 }
  0x4b   :  { %2191 = vmatpush3.bf16.msra.mxu1 %v2342_v26 }
  0x4c   :  { %2192 = vmatprep.subr.bf16.mxu1 %v2355_v30 }
  0x4f   :  { %2193 = vmatpush3.bf16.msra.mxu1 %v2355_v30 }
  0x51   :  { %1062 = vmatmul.mubr.bf16.gmra.mrb[8].mxu0 %v2327_v31  ;;  %1254 = vmatmul.mubr.bf16.gmra.mrb[8].mxu1 %v2328_v32 }
  0x52   :  { %1069 = vmatprep.mubr.bf16.mxu0 %v2330_v33  ;;  %1261 = vmatprep.mubr.bf16.mxu1 %v2332_v34 }
  0x59   :  { %1070 = vmatmul.mubr.bf16.gmra.mrb[12].mxu0 %v2334_v35  ;;  %1262 = vmatmul.mubr.bf16.gmra.mrb[12].mxu1 %v2335_v36 }
  0x5a   :  { %8 = vsyncpa [#allocation4], 0  ;;  %1077 = vmatprep.mubr.bf16.mxu0 %v2336_v37  ;;  %1269 = vmatprep.mubr.bf16.mxu1 %v2338_v38  ;;  %v2340_v39 = vld [vmem:[%s3109_s0 + $0x60] ss:$12 sps:$4 sm:$0xff]   ;;  %v2343_v41 = vld [vmem:[%s3109_s0 + $0x7c] ss:$12 sps:$4 sm:$0xff]  }
  0x5b   :  { %v2341_v40 = vld [vmem:[%s3109_s0 + $0x2a0] ss:$12 sps:$4 sm:$0xff]   ;;  %v2345_v42 = vld [vmem:[%s3109_s0 + $0x2bc] ss:$12 sps:$4 sm:$0xff]   ;;  %v2347_v43 = vld [vmem:[%s3109_s0 + $0x78] ss:$12 sps:$4 sm:$0xff]  }
  0x5c   :  { %v2348_v44 = vld [vmem:[%s3109_s0 + $0x2b8] ss:$12 sps:$4 sm:$0xff]   ;;  %v2349_v45 = vld [vmem:[%s3109_s0 + $0x94] ss:$12 sps:$4 sm:$0xff]   ;;  %v2353_v47 = vld [vmem:[%s3109_s0 + $0x90] ss:$12 sps:$4 sm:$0xff]  }
  0x5d   :  { %v2351_v46 = vld [vmem:[%s3109_s0 + $0x2d4] ss:$12 sps:$4 sm:$0xff]   ;;  %v2354_v48 = vld [vmem:[%s3109_s0 + $0x2d0] ss:$12 sps:$4 sm:$0xff]   ;;  %v2356_v49 = vld [vmem:[%s3109_s0 + $0xac] ss:$12 sps:$4 sm:$0xff]  }
  0x5e   :  { %v2358_v50 = vld [vmem:[%s3109_s0 + $0x2ec] ss:$12 sps:$4 sm:$0xff]   ;;  %v2360_v51 = vld [vmem:[%s3109_s0 + $0xa8] ss:$12 sps:$4 sm:$0xff]   ;;  %v2362_v53 = vld [vmem:[%s3109_s0 + $0xc4] ss:$12 sps:$4 sm:$0xff]  }
  0x5f   :  { %v2361_v52 = vld [vmem:[%s3109_s0 + $0x2e8] ss:$12 sps:$4 sm:$0xff]   ;;  %vm916_vm0 = vcmask 523264   ;;  %v2365_v55 = vld [vmem:[%s3109_s0 + $0xc0] ss:$12 sps:$4 sm:$0xff]  }
  0x60   :  { %v2364_v54 = vld [vmem:[%s3109_s0 + $0x8] ss:$12 sps:$4 sm:$0xff]   ;;  %v2366_v56 = vld [vmem:[%s3109_s0 + $0x20] ss:$12 sps:$4 sm:$0xff]   ;;  %v2369_v58 = vld [vmem:[%s3109_s0 + $0x38] ss:$12 sps:$4 sm:$0xff]  }
  0x61   :  { %1078 = vmatmul.mubr.bf16.gmra.mrb[16].mxu0 %v2340_v39  ;;  %1270 = vmatmul.mubr.bf16.gmra.mrb[16].mxu1 %v2341_v40  ;;  %v2367_v57 = vld [vmem:[%s3109_s0 + $0xdc] ss:$12 sps:$4 sm:$0xff]   ;;  %v2370_v59 = vld [vmem:[%s3109_s0 + $0xd8] ss:$12 sps:$4 sm:$0xff]   ;;  %v2372_v61 = vld [vmem:[%s3109_s0 + $0xf4] ss:$12 sps:$4 sm:$0xff]  }
  0x62   :  { %1085 = vmatprep.mubr.bf16.mxu0 %v2343_v41  ;;  %1277 = vmatprep.mubr.bf16.mxu1 %v2345_v42  ;;  %v2371_v60 = vld [vmem:[%s3109_s0 + $0x50] ss:$12 sps:$4 sm:$0xff]   ;;  %v2374_v62 = vld [vmem:[%s3109_s0 + $0x68] ss:$12 sps:$4 sm:$0xff]   ;;  %v2376_v0 = vld [vmem:[%s3109_s0 + $0x80] ss:$12 sps:$4 sm:$0xff]  }
  0x63   :  { %v2375_v63 = vld [vmem:[%s3109_s0 + $0xf0] ss:$12 sps:$4 sm:$0xff]   ;;  %v2377_v1 = vld [vmem:[%s3109_s0 + $0x10c] ss:$12 sps:$4 sm:$0xff]   ;;  %v2380_v3 = vld [vmem:[%s3109_s0 + $0x108] ss:$12 sps:$4 sm:$0xff]  }
  0x64   :  { %v2379_v2 = vld [vmem:[%s3109_s0 + $0x98] ss:$12 sps:$4 sm:$0xff]   ;;  %v2381_v4 = vld [vmem:[%s3109_s0 + $0xb0] ss:$12 sps:$4 sm:$0xff]   ;;  %v2384_v6 = vld [vmem:[%s3109_s0 + $0xc8] ss:$12 sps:$4 sm:$0xff]  }
  0x65   :  { %v2382_v5 = vld [vmem:[%s3109_s0 + $0x124] ss:$12 sps:$4 sm:$0xff]   ;;  %v2385_v7 = vld [vmem:[%s3109_s0 + $0x120] ss:$12 sps:$4 sm:$0xff]   ;;  %v2387_v9 = vld [vmem:[%s3109_s0 + $0x13c] ss:$12 sps:$4 sm:$0xff]  }
  0x66   :  { %v2386_v8 = vld [vmem:[%s3109_s0 + $0xe0] ss:$12 sps:$4 sm:$0xff]   ;;  %v2389_v10 = vld [vmem:[%s3109_s0 + $0xf8] ss:$12 sps:$4 sm:$0xff]   ;;  %v2391_v12 = vld [vmem:[%s3109_s0 + $0x110] ss:$12 sps:$4 sm:$0xff]  }
  0x67   :  { %v2390_v11 = vld [vmem:[%s3109_s0 + $0x138] ss:$12 sps:$4 sm:$0xff]   ;;  %v2392_v13 = vld [vmem:[%s3109_s0 + $0x154] ss:$12 sps:$4 sm:$0xff]   ;;  %v2395_v15 = vld [vmem:[%s3109_s0 + $0x150] ss:$12 sps:$4 sm:$0xff]  }
  0x68   :  { %v2394_v14 = vld [vmem:[%s3109_s0 + $0x128] ss:$12 sps:$4 sm:$0xff]   ;;  %v2396_v16 = vld [vmem:[%s3109_s0 + $0x140] ss:$12 sps:$4 sm:$0xff]   ;;  %v2399_v18 = vld [vmem:[%s3109_s0 + $0x158] ss:$12 sps:$4 sm:$0xff]  }
  0x69   :  { %1086 = vmatmul.mubr.bf16.gmra.mrb[20].mxu0 %v2347_v43  ;;  %1278 = vmatmul.mubr.bf16.gmra.mrb[20].mxu1 %v2348_v44  ;;  %v2397_v17 = vld [vmem:[%s3109_s0 + $0x16c] ss:$12 sps:$4 sm:$0xff]   ;;  %v2400_v19 = vld [vmem:[%s3109_s0 + $0x168] ss:$12 sps:$4 sm:$0xff]   ;;  %v2401_v20 = vld [vmem:[%s3109_s0 + $0x170] ss:$12 sps:$4 sm:$0xff]  }
  0x6a   :  { %1093 = vmatprep.mubr.bf16.mxu0 %v2349_v45  ;;  %1285 = vmatprep.mubr.bf16.mxu1 %v2351_v46  ;;  %v2402_v21 = vld [vmem:[%s3109_s0 + $0x184] ss:$12 sps:$4 sm:$0xff]   ;;  %v2404_v22 = vld [vmem:[%s3109_s0 + $0x188] ss:$12 sps:$4 sm:$0xff]   ;;  %v2405_v23 = vld [vmem:[%s3109_s0 + $0x180] ss:$12 sps:$4 sm:$0xff]  }
  0x6b   :  { %v2406_v24 = vld [vmem:[%s3109_s0 + $0x1a0] ss:$12 sps:$4 sm:$0xff]   ;;  %v2407_v25 = vld [vmem:[%s3109_s0 + $0x19c] ss:$12 sps:$4 sm:$0xff]   ;;  %v2409_v26 = vld [vmem:[%s3109_s0 + $0x1b8] ss:$12 sps:$4 sm:$0xff]  }
  0x6c   :  { %v2410_v27 = vld [vmem:[%s3109_s0 + $0x198] ss:$12 sps:$4 sm:$0xff]   ;;  %v2411_v28 = vld [vmem:[%s3109_s0 + $0x1d0] ss:$12 sps:$4 sm:$0xff]   ;;  %v2412_v29 = vld [vmem:[%s3109_s0 + $0x1b4] ss:$12 sps:$4 sm:$0xff]  }
  0x6d   :  { %v2414_v30 = vld [vmem:[%s3109_s0 + $0x1e8] ss:$12 sps:$4 sm:$0xff]   ;;  %v2415_v31 = vld [vmem:[%s3109_s0 + $0x1b0] ss:$12 sps:$4 sm:$0xff]   ;;  %v2416_v32 = vld [vmem:[%s3109_s0 + $0x200] ss:$12 sps:$4 sm:$0xff]  }
  0x6e   :  { %v2417_v33 = vld [vmem:[%s3109_s0 + $0x1cc] ss:$12 sps:$4 sm:$0xff]   ;;  %v2420_v35 = vld [vmem:[%s3109_s0 + $0x1c8] ss:$12 sps:$4 sm:$0xff]   ;;  %v2421_v36 = vld [vmem:[%s3109_s0 + $0x230] ss:$12 sps:$4 sm:$0xff]  }
  0x6f   :  { %v2419_v34 = vld [vmem:[%s3109_s0 + $0x218] ss:$12 sps:$4 sm:$0xff]   ;;  %v2424_v38 = vld [vmem:[%s3109_s0 + $0x248] ss:$12 sps:$4 sm:$0xff]   ;;  %v2425_v39 = vld [vmem:[%s3109_s0 + $0x1e0] ss:$12 sps:$4 sm:$0xff]  }
  0x70   :  { %v2422_v37 = vld [vmem:[%s3109_s0 + $0x1e4] ss:$12 sps:$4 sm:$0xff]   ;;  %v2426_v40 = vld [vmem:[%s3109_s0 + $0x260] ss:$12 sps:$4 sm:$0xff]   ;;  %v2427_v41 = vld [vmem:[%s3109_s0 + $0x1fc] ss:$12 sps:$4 sm:$0xff]  }
  0x71   :  { %1094 = vmatmul.mubr.bf16.gmra.mrb[24].mxu0 %v2353_v47  ;;  %1286 = vmatmul.mubr.bf16.gmra.mrb[24].mxu1 %v2354_v48  ;;  %v2429_v42 = vld [vmem:[%s3109_s0 + $0x278] ss:$12 sps:$4 sm:$0xff]   ;;  %v2431_v44 = vld [vmem:[%s3109_s0 + $0x290] ss:$12 sps:$4 sm:$0xff]   ;;  %v2432_v45 = vld [vmem:[%s3109_s0 + $0x214] ss:$12 sps:$4 sm:$0xff]  }
  0x72   :  { %1101 = vmatprep.mubr.bf16.mxu0 %v2356_v49  ;;  %1293 = vmatprep.mubr.bf16.mxu1 %v2358_v50  ;;  %v2430_v43 = vld [vmem:[%s3109_s0 + $0x1f8] ss:$12 sps:$4 sm:$0xff]   ;;  %v2434_v46 = vld [vmem:[%s3109_s0 + $0x2a8] ss:$12 sps:$4 sm:$0xff]   ;;  %v2435_v47 = vld [vmem:[%s3109_s0 + $0x210] ss:$12 sps:$4 sm:$0xff]  }
  0x73   :  { %v2436_v48 = vld [vmem:[%s3109_s0 + $0x2c0] ss:$12 sps:$4 sm:$0xff]   ;;  %v2439_v50 = vld [vmem:[%s3109_s0 + $0x2d8] ss:$12 sps:$4 sm:$0xff]  }
  0x74   :  { %v2437_v49 = vld [vmem:[%s3109_s0 + $0x22c] ss:$12 sps:$4 sm:$0xff]  }
  0x79   :  { %1102 = vmatmul.mubr.bf16.gmra.mrb[28].mxu0 %v2360_v51  ;;  %1294 = vmatmul.mubr.bf16.gmra.mrb[28].mxu1 %v2361_v52  ;;  %v2440_v51 = vld [vmem:[%s3109_s0 + $0x228] ss:$12 sps:$4 sm:$0xff]   ;;  %v2441_v52 = vld [vmem:[%s3109_s0 + $0x2f0] ss:$12 sps:$4 sm:$0xff]  }
  0x7a   :  { %1109 = vmatprep.mubr.bf16.mxu0 %v2362_v53  ;;  %2194 = vmatprep.mubr.msk.bf16.mxu1 %vm916_vm0, %v2364_v54 }
  0x81   :  { %1110 = vmatmul.mubr.bf16.gmra.mrb[32].mxu0 %v2365_v55  ;;  %2195 = vmatmul.mubr.msk.bf16.vlgmr.msra.gmra.mrb[32].mxu1 %vm916_vm0, %v2366_v56 }
  0x82   :  { %1117 = vmatprep.mubr.bf16.mxu0 %v2367_v57  ;;  %2198 = vmatprep.mubr.msk.bf16.mxu1 %vm916_vm0, %v2369_v58 }
  0x89   :  { %1118 = vmatmul.mubr.bf16.gmra.mrb[36].mxu0 %v2370_v59  ;;  %2199 = vmatmul.mubr.msk.bf16.gmra.mrb[36].mxu1 %vm916_vm0, %v2371_v60 }
  0x8a   :  { %1125 = vmatprep.mubr.bf16.mxu0 %v2372_v61  ;;  %2202 = vmatprep.mubr.msk.bf16.mxu1 %vm916_vm0, %v2374_v62 }
  0x91   :  { %1126 = vmatmul.mubr.bf16.gmra.mrb[40].mxu0 %v2375_v63  ;;  %2203 = vmatmul.mubr.msk.bf16.gmra.mrb[40].mxu1 %vm916_vm0, %v2376_v0 }
  0x92   :  { %1133 = vmatprep.mubr.bf16.mxu0 %v2377_v1  ;;  %2206 = vmatprep.mubr.msk.bf16.mxu1 %vm916_vm0, %v2379_v2 }
  0x99   :  { %1134 = vmatmul.mubr.bf16.gmra.mrb[44].mxu0 %v2380_v3  ;;  %2207 = vmatmul.mubr.msk.bf16.gmra.mrb[44].mxu1 %vm916_vm0, %v2381_v4 }
  0x9a   :  { %1141 = vmatprep.mubr.bf16.mxu0 %v2382_v5  ;;  %2210 = vmatprep.mubr.msk.bf16.mxu1 %vm916_vm0, %v2384_v6 }
  0xa1   :  { %1142 = vmatmul.mubr.bf16.gmra.mrb[48].mxu0 %v2385_v7  ;;  %2211 = vmatmul.mubr.msk.bf16.gmra.mrb[48].mxu1 %vm916_vm0, %v2386_v8 }
  0xa2   :  { %1149 = vmatprep.mubr.bf16.mxu0 %v2387_v9  ;;  %2214 = vmatprep.mubr.msk.bf16.mxu1 %vm916_vm0, %v2389_v10 }
  0xa9   :  { %1150 = vmatmul.mubr.bf16.gmra.mrb[52].mxu0 %v2390_v11  ;;  %2215 = vmatmul.mubr.msk.bf16.gmra.mrb[52].mxu1 %vm916_vm0, %v2391_v12 }
  0xaa   :  { %1157 = vmatprep.mubr.bf16.mxu0 %v2392_v13  ;;  %2218 = vmatprep.mubr.msk.bf16.mxu1 %vm916_vm0, %v2394_v14 }
  0xb1   :  { %1158 = vmatmul.mubr.bf16.gmra.mrb[56].mxu0 %v2395_v15  ;;  %2219 = vmatmul.mubr.msk.bf16.gmra.mrb[56].mxu1 %vm916_vm0, %v2396_v16 }
  0xb2   :  { %1165 = vmatprep.mubr.bf16.mxu0 %v2397_v17  ;;  %2222 = vmatprep.mubr.msk.bf16.mxu1 %vm916_vm0, %v2399_v18 }
  0xb9   :  { %1166 = vmatmul.mubr.bf16.gmra.mrb[60].mxu0 %v2400_v19  ;;  %2223 = vmatmul.mubr.msk.bf16.gmra.mrb[60].mxu1 %vm916_vm0, %v2401_v20 }
  0xba   :  { %1173 = vmatprep.mubr.bf16.mxu0 %v2402_v21  ;;  %2226 = vmatprep.mubr.msk.bf16.mxu1 %vm916_vm0, %v2404_v22 }
  0xc1   :  { %1174 = vmatmul.mubr.bf16.gmra.mrb[64].mxu0 %v2405_v23  ;;  %2227 = vmatmul.mubr.msk.bf16.gmra.mrb[64].mxu1 %vm916_vm0, %v2406_v24 }
  0xc2   :  { %1181 = vmatprep.mubr.bf16.mxu0 %v2407_v25  ;;  %2230 = vmatprep.mubr.msk.bf16.mxu1 %vm916_vm0, %v2409_v26 }
  0xc9   :  { %1182 = vmatmul.mubr.bf16.gmra.mrb[68].mxu0 %v2410_v27  ;;  %2231 = vmatmul.mubr.msk.bf16.gmra.mrb[68].mxu1 %vm916_vm0, %v2411_v28 }
  0xca   :  { %1189 = vmatprep.mubr.bf16.mxu0 %v2412_v29  ;;  %2234 = vmatprep.mubr.msk.bf16.mxu1 %vm916_vm0, %v2414_v30 }
  0xd1   :  { %1190 = vmatmul.mubr.bf16.gmra.mrb[72].mxu0 %v2415_v31  ;;  %2235 = vmatmul.mubr.msk.bf16.gmra.mrb[72].mxu1 %vm916_vm0, %v2416_v32 }
  0xd2   :  { %1197 = vmatprep.mubr.bf16.mxu0 %v2417_v33  ;;  %2238 = vmatprep.mubr.msk.bf16.mxu1 %vm916_vm0, %v2419_v34 }
  0xd9   :  { %1198 = vmatmul.mubr.bf16.gmra.mrb[76].mxu0 %v2420_v35  ;;  %2239 = vmatmul.mubr.msk.bf16.gmra.mrb[76].mxu1 %vm916_vm0, %v2421_v36 }
  0xda   :  { %1205 = vmatprep.mubr.bf16.mxu0 %v2422_v37  ;;  %2242 = vmatprep.mubr.msk.bf16.mxu1 %vm916_vm0, %v2424_v38 }
  0xe1   :  { %1206 = vmatmul.mubr.bf16.gmra.mrb[80].mxu0 %v2425_v39  ;;  %2243 = vmatmul.mubr.msk.bf16.gmra.mrb[80].mxu1 %vm916_vm0, %v2426_v40 }
  0xe2   :  { %1213 = vmatprep.mubr.bf16.mxu0 %v2427_v41  ;;  %2246 = vmatprep.mubr.msk.bf16.mxu1 %vm916_vm0, %v2429_v42 }
  0xe9   :  { %1214 = vmatmul.mubr.bf16.gmra.mrb[84].mxu0 %v2430_v43  ;;  %2247 = vmatmul.mubr.msk.bf16.gmra.mrb[84].mxu1 %vm916_vm0, %v2431_v44 }
  0xea   :  { %1221 = vmatprep.mubr.bf16.mxu0 %v2432_v45  ;;  %2250 = vmatprep.mubr.msk.bf16.mxu1 %vm916_vm0, %v2434_v46 }
  0xf1   :  { %1222 = vmatmul.mubr.bf16.gmra.mrb[88].mxu0 %v2435_v47  ;;  %2251 = vmatmul.mubr.msk.bf16.gmra.mrb[88].mxu1 %vm916_vm0, %v2436_v48 }
  0xf2   :  { %1229 = vmatprep.mubr.bf16.mxu0 %v2437_v49  ;;  %2254 = vmatprep.mubr.msk.bf16.mxu1 %vm916_vm0, %v2439_v50 }
  0xf9   :  { %1230 = vmatmul.mubr.bf16.gmra.mrb[92].mxu0 %v2440_v51  ;;  %2255 = vmatmul.mubr.msk.bf16.gmra.mrb[92].mxu1 %vm916_vm0, %v2441_v52 }
 0x114   :  { %v2902_v53 = vpop.f32.mrb[0].mxu0  ;;  %v2904_v54 = vpop.f32.mrb[0].mxu1 }
 0x115   :  { %v1049_v55 = vpop.f32.mrb[1].mxu0  ;;  %v1241_v56 = vpop.f32.mrb[1].mxu1 }
 0x116   :  { %v2906_v57 = vpop.f32.mrb[2].mxu0  ;;  %v2908_v58 = vpop.f32.mrb[2].mxu1 }
 0x117   :  { %v1052_v59 = vpop.f32.mrb[3].mxu0  ;;  %v1244_v60 = vpop.f32.mrb[3].mxu1 }
 0x118   :  { %v2967_v59 = vld [vmem:[%s3111_s2] ss:$0 sm:$0xff]  ;;  %s2467_s2 = smov [#allocation3]  }
 0x119   :  { %s1990_s23 = sshll.u32 %s2467_s2, 4  ;;  %s1991_s23 = int_to_ptr.vmem [resolvable:$true] %s1990_s23 }
 0x11a   :  { %s2442_s24 = scalar_lea.vmem %s1991_s23, 8192  ;;  %p2447_p1 = scmp.lt.s32.totalorder %s1991_s23, %s1991_s23 }
 0x11b   :  { %p2443_p0 = scmp.ne.s32.totalorder %s1991_s23, %s2442_s24  ;;  %p2448_p2 = scmp.lt.s32.totalorder %s2442_s24, %s2442_s24 }
 0x11c   :  { %v1055_v61 = vpop.f32.mrb[4].mxu0  ;;  %v2910_v62 = vpop.f32.mrb[4].mxu1 }
 0x11d   :  { %v1057_v63 = vpop.f32.mrb[5].mxu0  ;;  %v1249_v0 = vpop.f32.mrb[5].mxu1  ;;  %p2449_p3 = por %p2448_p2, %p2447_p1 }
 0x11e   :  { %v1058_v1 = vpop.f32.mrb[6].mxu0  ;;  %v2912_v2 = vpop.f32.mrb[6].mxu1 }
 0x11f   :  { %v1060_v3 = vpop.f32.mrb[7].mxu0  ;;  %v1252_v4 = vpop.f32.mrb[7].mxu1  ;;  %p2450_p4 = pnand %p2449_p3, %p2443_p0 }
 0x124   :  { %v2914_v5 = vpop.f32.mrb[8].mxu0  ;;  %v2916_v6 = vpop.f32.mrb[8].mxu1 }
 0x125   :  { %v1065_v7 = vpop.f32.mrb[9].mxu0  ;;  %v1257_v8 = vpop.f32.mrb[9].mxu1 }
 0x126   :  { %v2918_v9 = vpop.f32.mrb[10].mxu0  ;;  %v2920_v10 = vpop.f32.mrb[10].mxu1 }
 0x127   :  { %v1068_v11 = vpop.f32.mrb[11].mxu0  ;;  %v1260_v12 = vpop.f32.mrb[11].mxu1 }
 0x12c   :  { %v2922_v13 = vpop.f32.mrb[12].mxu0  ;;  %v2924_v14 = vpop.f32.mrb[12].mxu1 }
 0x12d   :  { %v1073_v15 = vpop.f32.mrb[13].mxu0  ;;  %v1265_v16 = vpop.f32.mrb[13].mxu1 }
 0x12e   :  { %v2926_v17 = vpop.f32.mrb[14].mxu0  ;;  %v2928_v18 = vpop.f32.mrb[14].mxu1 }
 0x12f   :  { %v1076_v19 = vpop.f32.mrb[15].mxu0  ;;  %v1268_v20 = vpop.f32.mrb[15].mxu1 }
 0x134   :  { %v2930_v21 = vpop.f32.mrb[16].mxu0  ;;  %v2932_v22 = vpop.f32.mrb[16].mxu1 }
 0x135   :  { %v1081_v23 = vpop.f32.mrb[17].mxu0  ;;  %v1273_v24 = vpop.f32.mrb[17].mxu1 }
 0x136   :  { %v2934_v25 = vpop.f32.mrb[18].mxu0  ;;  %v2936_v26 = vpop.f32.mrb[18].mxu1 }
 0x137   :  { %v1084_v27 = vpop.f32.mrb[19].mxu0  ;;  %v1276_v28 = vpop.f32.mrb[19].mxu1 }
 0x13c   :  { %v2938_v29 = vpop.f32.mrb[20].mxu0  ;;  %v2940_v30 = vpop.f32.mrb[20].mxu1 }
 0x13d   :  { %v1089_v31 = vpop.f32.mrb[21].mxu0  ;;  %v1281_v32 = vpop.f32.mrb[21].mxu1 }
 0x13e   :  { %v2942_v33 = vpop.f32.mrb[22].mxu0  ;;  %v2944_v34 = vpop.f32.mrb[22].mxu1 }
 0x13f   :  { %v1092_v35 = vpop.f32.mrb[23].mxu0  ;;  %v1284_v36 = vpop.f32.mrb[23].mxu1 }
 0x144   :  { %v2946_v37 = vpop.f32.mrb[24].mxu0  ;;  %v2948_v38 = vpop.f32.mrb[24].mxu1 }
 0x145   :  { %v1097_v39 = vpop.f32.mrb[25].mxu0  ;;  %v1289_v40 = vpop.f32.mrb[25].mxu1 }
 0x146   :  { %v2950_v41 = vpop.f32.mrb[26].mxu0  ;;  %v2952_v42 = vpop.f32.mrb[26].mxu1 }
 0x147   :  { %v1100_v43 = vpop.f32.mrb[27].mxu0  ;;  %v1292_v44 = vpop.f32.mrb[27].mxu1 }
 0x14c   :  { %v2954_v45 = vpop.f32.mrb[28].mxu0  ;;  %v2956_v46 = vpop.f32.mrb[28].mxu1 }
 0x14d   :  { %v1105_v47 = vpop.f32.mrb[29].mxu0  ;;  %v1297_v48 = vpop.f32.mrb[29].mxu1 }
 0x14e   :  { %v2958_v49 = vpop.f32.mrb[30].mxu0  ;;  %v2960_v50 = vpop.f32.mrb[30].mxu1 }
 0x14f   :  { %v1108_v51 = vpop.f32.mrb[31].mxu0  ;;  %v1300_v52 = vpop.f32.mrb[31].mxu1 }
 0x154   :  { %v2962_v55 = vpop.f32.mrb[32].mxu0  ;;  %v2196_v56 = vpop.f32.mrb[32].mxu1 }
 0x155   :  { %v1345_v60 = vadd.f32 %v2196_v56, %v1055_v61  ;;  %v1113_v63 = vpop.f32.mrb[33].mxu0  ;;  %v1336_v0 = vpop.f32.mrb[33].mxu1 }
 0x156   :  { %v1337_v3 = vadd.f32 %v1336_v0, %v2902_v53  ;;  %v2970_v4 = vpop.f32.mrb[34].mxu0  ;;  %v2197_v7 = vpop.f32.mrb[34].mxu1 }
 0x157   :  { %v1795_v8 = vadd.f32 %v2967_v59, %v1345_v60  ;;  %v1348_v11 = vadd.f32 %v2197_v7, %v1058_v1  ;;  %v1116_v12 = vpop.f32.mrb[35].mxu0  ;;  %v1339_v15 = vpop.f32.mrb[35].mxu1 }
 0x158   :  { %v1793_v16 = vadd.f32 %v2967_v59, %v1337_v3  ;;  %v1340_v19 = vadd.f32 %v1339_v15, %v2906_v57 }
 0x159   :  { %v1859_v20 = vmax.f32 %v1795_v8, 0.0  ;;  %v1796_v23 = vadd.f32 %v2967_v59, %v1348_v11 }
 0x15a   :  { %v1857_v61 = vmax.f32 %v1793_v16, 0.0  ;;  %v1794_v24 = vadd.f32 %v2967_v59, %v1340_v19 }
 0x15b   :  { %1923 = vst [vmem:[#allocation3 + $0x10] sm:$0xff] %v1859_v20  ;;  %v1860_v53 = vmax.f32 %v1796_v23, 0.0 }
 0x15c   :  { %1921 = vst [vmem:[#allocation3] sm:$0xff] %v1857_v61  ;;  %v1858_v27 = vmax.f32 %v1794_v24, 0.0  ;;  %v2977_v28 = vpop.f32.mrb[36].mxu0  ;;  %v2200_v31 = vpop.f32.mrb[36].mxu1 }
 0x15d   :  { %1924 = vst [vmem:[#allocation3 + $0x18] sm:$0xff] %v1860_v53  ;;  %v1361_v1 = vadd.f32 %v2200_v31, %v2922_v13  ;;  %v1121_v32 = vpop.f32.mrb[37].mxu0  ;;  %v1352_v35 = vpop.f32.mrb[37].mxu1 }
 0x15e   :  { %1922 = vst [vmem:[#allocation3 + $0x8] sm:$0xff] %v1858_v27  ;;  %v1353_v57 = vadd.f32 %v1352_v35, %v2914_v5  ;;  %v2981_v36 = vpop.f32.mrb[38].mxu0  ;;  %v2201_v39 = vpop.f32.mrb[38].mxu1 }
 0x15f   :  { %v1799_v40 = vadd.f32 %v2967_v59, %v1361_v1  ;;  %v1364_v43 = vadd.f32 %v2201_v39, %v2926_v17  ;;  %v1124_v44 = vpop.f32.mrb[39].mxu0  ;;  %v1355_v47 = vpop.f32.mrb[39].mxu1 }
 0x160   :  { %v1797_v48 = vadd.f32 %v2967_v59, %v1353_v57  ;;  %v1356_v51 = vadd.f32 %v1355_v47, %v2918_v9 }
 0x161   :  { %v1863_v52 = vmax.f32 %v1799_v40, 0.0  ;;  %v1800_v13 = vadd.f32 %v2967_v59, %v1364_v43 }
 0x162   :  { %v1861_v56 = vmax.f32 %v1797_v48, 0.0  ;;  %v1798_v60 = vadd.f32 %v2967_v59, %v1356_v51 }
 0x163   :  { %1927 = vst [vmem:[#allocation3 + $0x30] sm:$0xff] %v1863_v52  ;;  %v1864_v5 = vmax.f32 %v1800_v13, 0.0 }
 0x164   :  { %1925 = vst [vmem:[#allocation3 + $0x20] sm:$0xff] %v1861_v56  ;;  %v1862_v63 = vmax.f32 %v1798_v60, 0.0  ;;  %v2989_v0 = vpop.f32.mrb[40].mxu0  ;;  %v2204_v3 = vpop.f32.mrb[40].mxu1 }
 0x165   :  { %1928 = vst [vmem:[#allocation3 + $0x38] sm:$0xff] %v1864_v5  ;;  %v1377_v17 = vadd.f32 %v2204_v3, %v2938_v29  ;;  %v1129_v7 = vpop.f32.mrb[41].mxu0  ;;  %v1368_v8 = vpop.f32.mrb[41].mxu1 }
 0x166   :  { %1926 = vst [vmem:[#allocation3 + $0x28] sm:$0xff] %v1862_v63  ;;  %v1369_v9 = vadd.f32 %v1368_v8, %v2930_v21  ;;  %v2993_v11 = vpop.f32.mrb[42].mxu0  ;;  %v2205_v12 = vpop.f32.mrb[42].mxu1 }
 0x167   :  { %v1803_v15 = vadd.f32 %v2967_v59, %v1377_v17  ;;  %v1380_v16 = vadd.f32 %v2205_v12, %v2942_v33  ;;  %v1132_v19 = vpop.f32.mrb[43].mxu0  ;;  %v1371_v20 = vpop.f32.mrb[43].mxu1 }
 0x168   :  { %v1801_v23 = vadd.f32 %v2967_v59, %v1369_v9  ;;  %v1372_v61 = vadd.f32 %v1371_v20, %v2934_v25 }
 0x169   :  { %v1867_v24 = vmax.f32 %v1803_v15, 0.0  ;;  %v1804_v29 = vadd.f32 %v2967_v59, %v1380_v16 }
 0x16a   :  { %v1865_v53 = vmax.f32 %v1801_v23, 0.0  ;;  %v1802_v27 = vadd.f32 %v2967_v59, %v1372_v61 }
 0x16b   :  { %1931 = vst [vmem:[#allocation3 + $0x50] sm:$0xff] %v1867_v24  ;;  %v1868_v21 = vmax.f32 %v1804_v29, 0.0 }
 0x16c   :  { %1929 = vst [vmem:[#allocation3 + $0x40] sm:$0xff] %v1865_v53  ;;  %v1866_v31 = vmax.f32 %v1802_v27, 0.0  ;;  %v1135_v1 = vpop.f32.mrb[44].mxu0  ;;  %v2208_v32 = vpop.f32.mrb[44].mxu1 }
 0x16d   :  { %1932 = vst [vmem:[#allocation3 + $0x58] sm:$0xff] %v1868_v21  ;;  %v1393_v33 = vadd.f32 %v2208_v32, %v2954_v45  ;;  %v1137_v35 = vpop.f32.mrb[45].mxu0  ;;  %v1384_v57 = vpop.f32.mrb[45].mxu1 }
 0x16e   :  { %1930 = vst [vmem:[#allocation3 + $0x48] sm:$0xff] %v1866_v31  ;;  %v1385_v25 = vadd.f32 %v1384_v57, %v2946_v37  ;;  %v1138_v39 = vpop.f32.mrb[46].mxu0  ;;  %v2209_v40 = vpop.f32.mrb[46].mxu1 }
 0x16f   :  { %v1807_v43 = vadd.f32 %v2967_v59, %v1393_v33  ;;  %v1396_v44 = vadd.f32 %v2209_v40, %v2958_v49  ;;  %v1140_v47 = vpop.f32.mrb[47].mxu0  ;;  %v1387_v48 = vpop.f32.mrb[47].mxu1 }
 0x170   :  { %v1805_v51 = vadd.f32 %v2967_v59, %v1385_v25  ;;  %v1388_v52 = vadd.f32 %v1387_v48, %v2950_v41 }
 0x171   :  { %v1871_v13 = vmax.f32 %v1807_v43, 0.0  ;;  %v1808_v45 = vadd.f32 %v2967_v59, %v1396_v44 }
 0x172   :  { %v1869_v56 = vmax.f32 %v1805_v51, 0.0  ;;  %v1806_v60 = vadd.f32 %v2967_v59, %v1388_v52 }
 0x173   :  { %1935 = vst [vmem:[#allocation3 + $0x70] sm:$0xff] %v1871_v13  ;;  %v1872_v37 = vmax.f32 %v1808_v45, 0.0 }
 0x174   :  { %1933 = vst [vmem:[#allocation3 + $0x60] sm:$0xff] %v1869_v56  ;;  %v1870_v5 = vmax.f32 %v1806_v60, 0.0  ;;  %v1143_v63 = vpop.f32.mrb[48].mxu0  ;;  %v2212_v3 = vpop.f32.mrb[48].mxu1 }
 0x175   :  { %1936 = vst [vmem:[#allocation3 + $0x78] sm:$0xff] %v1872_v37  ;;  %v1409_v49 = vadd.f32 %v2212_v3, %v2977_v28  ;;  %v1145_v17 = vpop.f32.mrb[49].mxu0  ;;  %v1400_v7 = vpop.f32.mrb[49].mxu1 }
 0x176   :  { %1934 = vst [vmem:[#allocation3 + $0x68] sm:$0xff] %v1870_v5  ;;  %v1401_v41 = vadd.f32 %v1400_v7, %v2962_v55  ;;  %v1146_v8 = vpop.f32.mrb[50].mxu0  ;;  %v2213_v9 = vpop.f32.mrb[50].mxu1 }
 0x177   :  { %v1811_v12 = vadd.f32 %v2967_v59, %v1409_v49  ;;  %v1412_v15 = vadd.f32 %v2213_v9, %v2981_v36  ;;  %v1148_v16 = vpop.f32.mrb[51].mxu0  ;;  %v1403_v19 = vpop.f32.mrb[51].mxu1 }
 0x178   :  { %v1809_v20 = vadd.f32 %v2967_v59, %v1401_v41  ;;  %v1404_v23 = vadd.f32 %v1403_v19, %v2970_v4 }
 0x179   :  { %v1875_v61 = vmax.f32 %v1811_v12, 0.0  ;;  %v1812_v28 = vadd.f32 %v2967_v59, %v1412_v15 }
 0x17a   :  { %v1873_v24 = vmax.f32 %v1809_v20, 0.0  ;;  %v1810_v29 = vadd.f32 %v2967_v59, %v1404_v23 }
 0x17b   :  { %1939 = vst [vmem:[#allocation3 + $0x90] sm:$0xff] %v1875_v61  ;;  %v1876_v55 = vmax.f32 %v1812_v28, 0.0 }
 0x17c   :  { %1937 = vst [vmem:[#allocation3 + $0x80] sm:$0xff] %v1873_v24  ;;  %v1874_v53 = vmax.f32 %v1810_v29, 0.0  ;;  %v1151_v27 = vpop.f32.mrb[52].mxu0  ;;  %v2216_v21 = vpop.f32.mrb[52].mxu1 }
 0x17d   :  { %1940 = vst [vmem:[#allocation3 + $0x98] sm:$0xff] %v1876_v55  ;;  %v1425_v36 = vadd.f32 %v2216_v21, %v1135_v1  ;;  %v1153_v31 = vpop.f32.mrb[53].mxu0  ;;  %v1416_v32 = vpop.f32.mrb[53].mxu1 }
 0x17e   :  { %1938 = vst [vmem:[#allocation3 + $0x88] sm:$0xff] %v1874_v53  ;;  %v1417_v33 = vadd.f32 %v1416_v32, %v2989_v0  ;;  %v1154_v4 = vpop.f32.mrb[54].mxu0  ;;  %v2217_v35 = vpop.f32.mrb[54].mxu1 }
 0x17f   :  { %v1815_v57 = vadd.f32 %v2967_v59, %v1425_v36  ;;  %v1428_v25 = vadd.f32 %v2217_v35, %v1138_v39  ;;  %v1156_v40 = vpop.f32.mrb[55].mxu0  ;;  %v1419_v43 = vpop.f32.mrb[55].mxu1 }
 0x180   :  { %v1813_v44 = vadd.f32 %v2967_v59, %v1417_v33  ;;  %v1420_v47 = vadd.f32 %v1419_v43, %v2993_v11 }
 0x181   :  { %v1879_v48 = vmax.f32 %v1815_v57, 0.0  ;;  %v1816_v51 = vadd.f32 %v2967_v59, %v1428_v25 }
 0x182   :  { %v1877_v1 = vmax.f32 %v1813_v44, 0.0  ;;  %v1814_v52 = vadd.f32 %v2967_v59, %v1420_v47 }
 0x183   :  { %1943 = vst [vmem:[#allocation3 + $0xb0] sm:$0xff] %v1879_v48  ;;  %v1880_v13 = vmax.f32 %v1816_v51, 0.0 }
 0x184   :  { %1941 = vst [vmem:[#allocation3 + $0xa0] sm:$0xff] %v1877_v1  ;;  %v1878_v0 = vmax.f32 %v1814_v52, 0.0  ;;  %v1159_v45 = vpop.f32.mrb[56].mxu0  ;;  %v2220_v56 = vpop.f32.mrb[56].mxu1 }
 0x185   :  { %1944 = vst [vmem:[#allocation3 + $0xb8] sm:$0xff] %v1880_v13  ;;  %v1441_v39 = vadd.f32 %v2220_v56, %v1151_v27  ;;  %v1161_v60 = vpop.f32.mrb[57].mxu0  ;;  %v1432_v37 = vpop.f32.mrb[57].mxu1 }
 0x186   :  { %1942 = vst [vmem:[#allocation3 + $0xa8] sm:$0xff] %v1878_v0  ;;  %v1433_v5 = vadd.f32 %v1432_v37, %v1143_v63  ;;  %v1162_v3 = vpop.f32.mrb[58].mxu0  ;;  %v2221_v11 = vpop.f32.mrb[58].mxu1 }
 0x187   :  { %v1819_v49 = vadd.f32 %v2967_v59, %v1441_v39  ;;  %v1444_v17 = vadd.f32 %v2221_v11, %v1154_v4  ;;  %v1164_v7 = vpop.f32.mrb[59].mxu0  ;;  %v1435_v41 = vpop.f32.mrb[59].mxu1 }
 0x188   :  { %v1817_v9 = vadd.f32 %v2967_v59, %v1433_v5  ;;  %v1436_v12 = vadd.f32 %v1435_v41, %v1146_v8 }
 0x189   :  { %v1883_v15 = vmax.f32 %v1819_v49, 0.0  ;;  %v1820_v16 = vadd.f32 %v2967_v59, %v1444_v17 }
 0x18a   :  { %v1881_v19 = vmax.f32 %v1817_v9, 0.0  ;;  %v1818_v20 = vadd.f32 %v2967_v59, %v1436_v12 }
 0x18b   :  { %1947 = vst [vmem:[#allocation3 + $0xd0] sm:$0xff] %v1883_v15  ;;  %v1884_v23 = vmax.f32 %v1820_v16, 0.0 }
 0x18c   :  { %1945 = vst [vmem:[#allocation3 + $0xc0] sm:$0xff] %v1881_v19  ;;  %v1882_v63 = vmax.f32 %v1818_v20, 0.0  ;;  %v1167_v61 = vpop.f32.mrb[60].mxu0  ;;  %v2224_v28 = vpop.f32.mrb[60].mxu1 }
 0x18d   :  { %1948 = vst [vmem:[#allocation3 + $0xd8] sm:$0xff] %v1884_v23  ;;  %v1457_v24 = vadd.f32 %v2224_v28, %v1167_v61  ;;  %v1169_v29 = vpop.f32.mrb[61].mxu0  ;;  %v1448_v55 = vpop.f32.mrb[61].mxu1 }
 0x18e   :  { %1946 = vst [vmem:[#allocation3 + $0xc8] sm:$0xff] %v1882_v63  ;;  %v1449_v53 = vadd.f32 %v1448_v55, %v1159_v45  ;;  %v1170_v27 = vpop.f32.mrb[62].mxu0  ;;  %v2225_v8 = vpop.f32.mrb[62].mxu1 }
 0x18f   :  { %v1823_v21 = vadd.f32 %v2967_v59, %v1457_v24  ;;  %v1460_v36 = vadd.f32 %v2225_v8, %v1170_v27  ;;  %v1172_v31 = vpop.f32.mrb[63].mxu0  ;;  %v1451_v32 = vpop.f32.mrb[63].mxu1 }
 0x190   :  { %v1821_v33 = vadd.f32 %v2967_v59, %v1449_v53  ;;  %v1452_v4 = vadd.f32 %v1451_v32, %v1162_v3 }
 0x191   :  { %v1887_v35 = vmax.f32 %v1823_v21, 0.0  ;;  %v1824_v57 = vadd.f32 %v2967_v59, %v1460_v36 }
 0x192   :  { %v1885_v25 = vmax.f32 %v1821_v33, 0.0  ;;  %v1822_v40 = vadd.f32 %v2967_v59, %v1452_v4 }
 0x193   :  { %1951 = vst [vmem:[#allocation3 + $0xf0] sm:$0xff] %v1887_v35  ;;  %v1888_v43 = vmax.f32 %v1824_v57, 0.0 }
 0x194   :  { %1949 = vst [vmem:[#allocation3 + $0xe0] sm:$0xff] %v1885_v25  ;;  %v1886_v44 = vmax.f32 %v1822_v40, 0.0  ;;  %v1175_v47 = vpop.f32.mrb[64].mxu0  ;;  %v2228_v48 = vpop.f32.mrb[64].mxu1 }
 0x195   :  { %1952 = vst [vmem:[#allocation3 + $0xf8] sm:$0xff] %v1888_v43  ;;  %v1177_v51 = vpop.f32.mrb[65].mxu0  ;;  %v1464_v1 = vpop.f32.mrb[65].mxu1 }
 0x196   :  { %1950 = vst [vmem:[#allocation3 + $0xe8] sm:$0xff] %v1886_v44  ;;  %v1465_v52 = vadd.f32 %v1464_v1, %v1175_v47  ;;  %v1178_v13 = vpop.f32.mrb[66].mxu0  ;;  %v2229_v0 = vpop.f32.mrb[66].mxu1 }
 0x197   :  { %v1180_v45 = vpop.f32.mrb[67].mxu0  ;;  %v1467_v56 = vpop.f32.mrb[67].mxu1 }
 0x198   :  { %v1825_v39 = vadd.f32 %v2967_v59, %v1465_v52  ;;  %v1468_v60 = vadd.f32 %v1467_v56, %v1178_v13 }
 0x19a   :  { %v1889_v37 = vmax.f32 %v1825_v39, 0.0  ;;  %v1826_v5 = vadd.f32 %v2967_v59, %v1468_v60 }
 0x19c   :  { %1953 = vst [vmem:[#allocation3 + $0x100] sm:$0xff] %v1889_v37  ;;  %v1890_v3 = vmax.f32 %v1826_v5, 0.0  ;;  %v1183_v11 = vpop.f32.mrb[68].mxu0  ;;  %v2232_v49 = vpop.f32.mrb[68].mxu1 }
 0x19d   :  { %v1473_v17 = vadd.f32 %v2228_v48, %v1183_v11  ;;  %v1185_v7 = vpop.f32.mrb[69].mxu0  ;;  %v1480_v41 = vpop.f32.mrb[69].mxu1 }
 0x19e   :  { %1954 = vst [vmem:[#allocation3 + $0x108] sm:$0xff] %v1890_v3  ;;  %v1186_v9 = vpop.f32.mrb[70].mxu0  ;;  %v2233_v12 = vpop.f32.mrb[70].mxu1 }
 0x19f   :  { %v1827_v15 = vadd.f32 %v2967_v59, %v1473_v17  ;;  %v1476_v16 = vadd.f32 %v2229_v0, %v1186_v9  ;;  %v1188_v19 = vpop.f32.mrb[71].mxu0  ;;  %v1483_v20 = vpop.f32.mrb[71].mxu1 }
 0x1a1   :  { %v1891_v23 = vmax.f32 %v1827_v15, 0.0  ;;  %v1828_v63 = vadd.f32 %v2967_v59, %v1476_v16 }
 0x1a3   :  { %1955 = vst [vmem:[#allocation3 + $0x110] sm:$0xff] %v1891_v23  ;;  %v1892_v61 = vmax.f32 %v1828_v63, 0.0 }
 0x1a4   :  { %v1191_v28 = vpop.f32.mrb[72].mxu0  ;;  %v3035_v24 = vpop.f32.mrb[72].mxu1 }
 0x1a5   :  { %1956 = vst [vmem:[#allocation3 + $0x118] sm:$0xff] %v1892_v61  ;;  %v1481_v29 = vadd.f32 %v1480_v41, %v1191_v28  ;;  %v1193_v55 = vpop.f32.mrb[73].mxu0  ;;  %v1496_v53 = vpop.f32.mrb[73].mxu1 }
 0x1a6   :  { %v1194_v27 = vpop.f32.mrb[74].mxu0  ;;  %v3037_v8 = vpop.f32.mrb[74].mxu1 }
 0x1a7   :  { %v1829_v21 = vadd.f32 %v2967_v59, %v1481_v29  ;;  %v1484_v36 = vadd.f32 %v1483_v20, %v1194_v27  ;;  %v1196_v31 = vpop.f32.mrb[75].mxu0  ;;  %v1499_v32 = vpop.f32.mrb[75].mxu1 }
 0x1a9   :  { %v1893_v33 = vmax.f32 %v1829_v21, 0.0  ;;  %v1830_v4 = vadd.f32 %v2967_v59, %v1484_v36 }
 0x1ab   :  { %1957 = vst [vmem:[#allocation3 + $0x120] sm:$0xff] %v1893_v33  ;;  %v1894_v35 = vmax.f32 %v1830_v4, 0.0 }
 0x1ac   :  { %v1199_v57 = vpop.f32.mrb[76].mxu0  ;;  %v3041_v25 = vpop.f32.mrb[76].mxu1 }
 0x1ad   :  { %1958 = vst [vmem:[#allocation3 + $0x128] sm:$0xff] %v1894_v35  ;;  %v1489_v40 = vadd.f32 %v2232_v49, %v1199_v57  ;;  %v1201_v43 = vpop.f32.mrb[77].mxu0  ;;  %v3043_v44 = vpop.f32.mrb[77].mxu1 }
 0x1ae   :  { %v1202_v47 = vpop.f32.mrb[78].mxu0  ;;  %v3045_v48 = vpop.f32.mrb[78].mxu1 }
 0x1af   :  { %v1831_v51 = vadd.f32 %v2967_v59, %v1489_v40  ;;  %v1492_v1 = vadd.f32 %v2233_v12, %v1202_v47  ;;  %v1204_v52 = vpop.f32.mrb[79].mxu0  ;;  %v3048_v13 = vpop.f32.mrb[79].mxu1 }
 0x1b1   :  { %v1895_v0 = vmax.f32 %v1831_v51, 0.0  ;;  %v1832_v45 = vadd.f32 %v2967_v59, %v1492_v1 }
 0x1b3   :  { %1959 = vst [vmem:[#allocation3 + $0x130] sm:$0xff] %v1895_v0  ;;  %v1896_v56 = vmax.f32 %v1832_v45, 0.0 }
 0x1b4   :  { %v1207_v39 = vpop.f32.mrb[80].mxu0  ;;  %v2244_v60 = vpop.f32.mrb[80].mxu1 }
 0x1b5   :  { %1960 = vst [vmem:[#allocation3 + $0x138] sm:$0xff] %v1896_v56  ;;  %v1497_v37 = vadd.f32 %v1496_v53, %v1207_v39  ;;  %v1537_v5 = vadd.f32 %v2244_v60, %v2910_v62  ;;  %v1209_v3 = vpop.f32.mrb[81].mxu0  ;;  %v1528_v11 = vpop.f32.mrb[81].mxu1 }
 0x1b6   :  { %v1529_v49 = vadd.f32 %v1528_v11, %v2904_v54  ;;  %v1210_v17 = vpop.f32.mrb[82].mxu0  ;;  %v2245_v7 = vpop.f32.mrb[82].mxu1 }
 0x1b7   :  { %v1833_v41 = vadd.f32 %v2967_v59, %v1497_v37  ;;  %v1843_v9 = vadd.f32 %v2967_v59, %v1537_v5  ;;  %v1500_v12 = vadd.f32 %v1499_v32, %v1210_v17  ;;  %v1540_v15 = vadd.f32 %v2245_v7, %v2912_v2  ;;  %v1212_v16 = vpop.f32.mrb[83].mxu0  ;;  %v1531_v19 = vpop.f32.mrb[83].mxu1 }
 0x1b8   :  { %v1841_v20 = vadd.f32 %v2967_v59, %v1529_v49  ;;  %v1532_v23 = vadd.f32 %v1531_v19, %v2908_v58 }
 0x1b9   :  { %v1897_v62 = vmax.f32 %v1833_v41, 0.0  ;;  %v1907_v63 = vmax.f32 %v1843_v9, 0.0  ;;  %v1834_v61 = vadd.f32 %v2967_v59, %v1500_v12  ;;  %v1844_v54 = vadd.f32 %v2967_v59, %v1540_v15 }
 0x1ba   :  { %v1905_v28 = vmax.f32 %v1841_v20, 0.0  ;;  %v1842_v29 = vadd.f32 %v2967_v59, %v1532_v23 }
 0x1bb   :  { %1961 = vst [vmem:[#allocation3 + $0x140] sm:$0xff] %v1897_v62  ;;  %1971 = vst [vmem:[#allocation3 + $0x190] sm:$0xff] %v1907_v63  ;;  %v1898_v55 = vmax.f32 %v1834_v61, 0.0  ;;  %v1908_v53 = vmax.f32 %v1844_v54, 0.0 }
 0x1bc   :  { %1969 = vst [vmem:[#allocation3 + $0x180] sm:$0xff] %v1905_v28  ;;  %v1906_v2 = vmax.f32 %v1842_v29, 0.0  ;;  %v1215_v27 = vpop.f32.mrb[84].mxu0  ;;  %v2248_v21 = vpop.f32.mrb[84].mxu1 }
 0x1bd   :  { %1962 = vst [vmem:[#allocation3 + $0x148] sm:$0xff] %v1898_v55  ;;  %1972 = vst [vmem:[#allocation3 + $0x198] sm:$0xff] %v1908_v53  ;;  %v1505_v58 = vadd.f32 %v3035_v24, %v1215_v27  ;;  %v1553_v36 = vadd.f32 %v2248_v21, %v2924_v14  ;;  %v1217_v31 = vpop.f32.mrb[85].mxu0  ;;  %v1544_v32 = vpop.f32.mrb[85].mxu1 }
 0x1be   :  { %1970 = vst [vmem:[#allocation3 + $0x188] sm:$0xff] %v1906_v2  ;;  %v1545_v33 = vadd.f32 %v1544_v32, %v2916_v6  ;;  %v1218_v4 = vpop.f32.mrb[86].mxu0  ;;  %v2249_v35 = vpop.f32.mrb[86].mxu1 }
 0x1bf   :  { %v1835_v57 = vadd.f32 %v2967_v59, %v1505_v58  ;;  %v1847_v40 = vadd.f32 %v2967_v59, %v1553_v36  ;;  %v1508_v43 = vadd.f32 %v3037_v8, %v1218_v4  ;;  %v1556_v47 = vadd.f32 %v2249_v35, %v2928_v18  ;;  %v1220_v51 = vpop.f32.mrb[87].mxu0  ;;  %v1547_v1 = vpop.f32.mrb[87].mxu1 }
 0x1c0   :  { %v1845_v24 = vadd.f32 %v2967_v59, %v1545_v33  ;;  %v1548_v14 = vadd.f32 %v1547_v1, %v2920_v10 }
 0x1c1   :  { %v1899_v52 = vmax.f32 %v1835_v57, 0.0  ;;  %v1911_v0 = vmax.f32 %v1847_v40, 0.0  ;;  %v1836_v6 = vadd.f32 %v2967_v59, %v1508_v43  ;;  %v1848_v45 = vadd.f32 %v2967_v59, %v1556_v47 }
 0x1c2   :  { %v1909_v56 = vmax.f32 %v1845_v24, 0.0  ;;  %v1846_v39 = vadd.f32 %v2967_v59, %v1548_v14 }
 0x1c3   :  { %1963 = vst [vmem:[#allocation3 + $0x150] sm:$0xff] %v1899_v52  ;;  %1975 = vst [vmem:[#allocation3 + $0x1b0] sm:$0xff] %v1911_v0  ;;  %v1900_v8 = vmax.f32 %v1836_v6, 0.0  ;;  %v1912_v60 = vmax.f32 %v1848_v45, 0.0 }
 0x1c4   :  { %1973 = vst [vmem:[#allocation3 + $0x1a0] sm:$0xff] %v1909_v56  ;;  %v1910_v18 = vmax.f32 %v1846_v39, 0.0  ;;  %v1223_v37 = vpop.f32.mrb[88].mxu0  ;;  %v2252_v5 = vpop.f32.mrb[88].mxu1 }
 0x1c5   :  { %1964 = vst [vmem:[#allocation3 + $0x158] sm:$0xff] %v1900_v8  ;;  %1976 = vst [vmem:[#allocation3 + $0x1b8] sm:$0xff] %v1912_v60  ;;  %v1513_v10 = vadd.f32 %v3043_v44, %v1223_v37  ;;  %v1569_v3 = vadd.f32 %v2252_v5, %v2940_v30  ;;  %v1225_v11 = vpop.f32.mrb[89].mxu0  ;;  %v1560_v49 = vpop.f32.mrb[89].mxu1 }
 0x1c6   :  { %1974 = vst [vmem:[#allocation3 + $0x1a8] sm:$0xff] %v1910_v18  ;;  %v1561_v17 = vadd.f32 %v1560_v49, %v2932_v22  ;;  %v1226_v7 = vpop.f32.mrb[90].mxu0  ;;  %v2253_v41 = vpop.f32.mrb[90].mxu1 }
 0x1c7   :  { %v1837_v9 = vadd.f32 %v2967_v59, %v1513_v10  ;;  %v1851_v12 = vadd.f32 %v2967_v59, %v1569_v3  ;;  %v1516_v15 = vadd.f32 %v3048_v13, %v1226_v7  ;;  %v1572_v16 = vadd.f32 %v2253_v41, %v2944_v34  ;;  %v1228_v19 = vpop.f32.mrb[91].mxu0  ;;  %v1563_v20 = vpop.f32.mrb[91].mxu1 }
 0x1c8   :  { %v1849_v44 = vadd.f32 %v2967_v59, %v1561_v17  ;;  %v1564_v30 = vadd.f32 %v1563_v20, %v2936_v26 }
 0x1c9   :  { %v1901_v23 = vmax.f32 %v1837_v9, 0.0  ;;  %v1915_v62 = vmax.f32 %v1851_v12, 0.0  ;;  %v1838_v22 = vadd.f32 %v2967_v59, %v1516_v15  ;;  %v1852_v63 = vadd.f32 %v2967_v59, %v1572_v16 }
 0x1ca   :  { %v1913_v61 = vmax.f32 %v1849_v44, 0.0  ;;  %v1850_v54 = vadd.f32 %v2967_v59, %v1564_v30 }
 0x1cb   :  { %1965 = vst [vmem:[#allocation3 + $0x160] sm:$0xff] %v1901_v23  ;;  %1979 = vst [vmem:[#allocation3 + $0x1d0] sm:$0xff] %v1915_v62  ;;  %v1902_v13 = vmax.f32 %v1838_v22, 0.0  ;;  %v1916_v28 = vmax.f32 %v1852_v63, 0.0 }
 0x1cc   :  { %1977 = vst [vmem:[#allocation3 + $0x1c0] sm:$0xff] %v1913_v61  ;;  %v1914_v34 = vmax.f32 %v1850_v54, 0.0  ;;  %v1231_v29 = vpop.f32.mrb[92].mxu0  ;;  %v2256_v55 = vpop.f32.mrb[92].mxu1 }
 0x1cd   :  { %1966 = vst [vmem:[#allocation3 + $0x168] sm:$0xff] %v1902_v13  ;;  %1980 = vst [vmem:[#allocation3 + $0x1d8] sm:$0xff] %v1916_v28  ;;  %v1521_v26 = vadd.f32 %v3041_v25, %v1231_v29  ;;  %v1585_v53 = vadd.f32 %v2256_v55, %v2956_v46  ;;  %v1233_v2 = vpop.f32.mrb[93].mxu0  ;;  %v1576_v27 = vpop.f32.mrb[93].mxu1 }
 0x1ce   :  { %1978 = vst [vmem:[#allocation3 + $0x1c8] sm:$0xff] %v1914_v34  ;;  %v1577_v21 = vadd.f32 %v1576_v27, %v2948_v38  ;;  %v1234_v58 = vpop.f32.mrb[94].mxu0  ;;  %v2257_v36 = vpop.f32.mrb[94].mxu1 }
 0x1cf   :  { %v1839_v31 = vadd.f32 %v2967_v59, %v1521_v26  ;;  %v1855_v32 = vadd.f32 %v2967_v59, %v1585_v53  ;;  %v1524_v33 = vadd.f32 %v3045_v48, %v1234_v58  ;;  %v1588_v4 = vadd.f32 %v2257_v36, %v2960_v50  ;;  %v1236_v35 = vpop.f32.mrb[95].mxu0  ;;  %v1579_v57 = vpop.f32.mrb[95].mxu1 }
 0x1d0   :  { %v1853_v25 = vadd.f32 %v2967_v59, %v1577_v21  ;;  %v1580_v46 = vadd.f32 %v1579_v57, %v2952_v42 }
 0x1d1   :  { %v1903_v40 = vmax.f32 %v1839_v31, 0.0  ;;  %v1919_v38 = vmax.f32 %v1855_v32, 0.0  ;;  %v1840_v43 = vadd.f32 %v2967_v59, %v1524_v33  ;;  %v1856_v47 = vadd.f32 %v2967_v59, %v1588_v4 }
 0x1d2   :  { %v1917_v51 = vmax.f32 %v1853_v25, 0.0  ;;  %v1854_v1 = vadd.f32 %v2967_v59, %v1580_v46 }
 0x1d3   :  { %1967 = vst [vmem:[#allocation3 + $0x170] sm:$0xff] %v1903_v40  ;;  %1983 = vst [vmem:[#allocation3 + $0x1f0] sm:$0xff] %v1919_v38  ;;  %v1904_v50 = vmax.f32 %v1840_v43, 0.0  ;;  %v1920_v48 = vmax.f32 %v1856_v47, 0.0 }
 0x1d4   :  { %1981 = vst [vmem:[#allocation3 + $0x1e0] sm:$0xff] %v1917_v51  ;;  %v1918_v24 = vmax.f32 %v1854_v1, 0.0 }
 0x1d5   :  { %1968 = vst [vmem:[#allocation3 + $0x178] sm:$0xff] %v1904_v50  ;;  %1984 = vst [vmem:[#allocation3 + $0x1f8] sm:$0xff] %v1920_v48 }
 0x1d6   :  { %1982 = vst [vmem:[#allocation3 + $0x1e8] sm:$0xff] %v1918_v24 }
 0x1d7   :  { %2453 = shalt.err (!%p2450_p4)
}
 0x1d8   :  { %s2454_s26 = scalar_lea.hbm %s3112_s3, 8192 }
 0x1d9   :  { %p2455_p5 = scmp.ne.s32.totalorder %s3112_s3, %s2454_s26  ;;  %p2458_p6 = scmp.lt.u32.totalorder %s2454_s26, %s3112_s3 }
 0x1db   :  { %p2460_p7 = pnand %p2458_p6, %p2455_p5 }
 0x1dd   :  { %2463 = shalt.err (!%p2460_p7)
}
 0x1de   :  { %s2468_s4 = smov 128   ;;  %s2469_s5 = smov 8  }
 0x1df   :  { %1996 = dma.vmem_to_hbm [thread:$0]  %s1991_s23, 8192, %s3112_s3, [#allocation4], %s2468_s4, %s2468_s4, %s2469_s5  }
 0x1e0   :  { %2464 = dma.done.wait [#allocation4], 8192  }
 0x1e1   :  { %2465 = vsyncadd [#allocation4], 4294959104 }
 0x1e2   :  { %2000 = vsyncpa [#allocation4], 1 }

</bundles_post_ra>
